<compile_context>
chip_gen: v6e
topology: v6e:2x2x1
jax: 0.10.0
libtpu: 0.0.40
codegen_flags: <defaults>
</compile_context>

<pallas_src>
import functools
import math

import jax
import jax.numpy as jnp
from jax import lax
from jax.experimental import pallas as pl
from jax.experimental.pallas import tpu as pltpu


# ----------------------------------------------------------------------------
# Fused Pallas kernel: whole TripletTransformer forward
# ----------------------------------------------------------------------------

def _triplet_transformer_kernel(*refs, n_heads, n_hidden, eps):
    (x_ref, bias_ref, mask_ref, an_g, an_b, qkv_w, qkv_b,
     ri_w, ri_b, rn_g, rn_b, fi_w, fi_b) = refs[:13]
    hid_refs = refs[13:13 + 2 * n_hidden]
    fo_w, fo_b, o_ref, agg_ref = refs[13 + 2 * n_hidden:]

    x = x_ref[...]                                    # [N, d] f32
    N, d = x.shape
    dh = d // n_heads

    def layer_norm(v, g_ref, b_ref):
        mu = jnp.mean(v, axis=-1, keepdims=True)
        c = v - mu
        var = jnp.mean(c * c, axis=-1, keepdims=True)
        return c * lax.rsqrt(var + eps) * g_ref[...] + b_ref[...]

    def gelu(v):  # torch.nn.GELU() default (erf formulation)
        return 0.5 * v * (1.0 + lax.erf(v * (1.0 / math.sqrt(2.0))))

    # ---- attention_norm + QKV projection (lane-dense [N, 3d] slab) ----
    # Query scale is already folded into the Q columns of qkv_w / qkv_b.
    h = layer_norm(x, an_g, an_b).astype(jnp.bfloat16)
    qkv = (jnp.dot(h, qkv_w[...], preferred_element_type=jnp.float32)
           + qkv_b[...])                              # [N, 3d] f32

    # ---- per-head dense masked graph attention ----
    # s[dst, src] = Q[src]·K[dst] + bias[dst, src]   (u_dot_v('Q','K'))
    # p = edge_softmax over incoming edges of dst; agg[dst] = sum_src p * V[src]
    mask = mask_ref[...]                              # [N_dst, N_src] f32, shared by heads
    for hd in range(n_heads):
        lo = hd * dh
        q_h = qkv[:, lo:lo + dh]                      # [N_src, dh] (scale pre-folded)
        k_h = qkv[:, d + lo:d + lo + dh]              # [N_dst, dh]
        v_h = qkv[:, 2 * d + lo:2 * d + lo + dh].astype(jnp.bfloat16)
        s = lax.dot_general(k_h, q_h, (((1,), (1,)), ((), ())),
                            preferred_element_type=jnp.float32)
        s = s + bias_ref[hd].astype(jnp.float32)      # [N_dst, N_src]
        m = jnp.max(s, axis=-1, keepdims=True)
        p = jnp.exp(s - m) * mask
        denom = jnp.sum(p, axis=-1, keepdims=True)
        p = p * pl.reciprocal(jnp.where(denom > 0.0, denom, 1.0), approx=True)
        agg_ref[:, lo:lo + dh] = jnp.dot(p.astype(jnp.bfloat16), v_h,
                                         preferred_element_type=jnp.float32)

    agg = agg_ref[...].astype(jnp.bfloat16)           # [N, d]

    # ---- Residual node_out_layer: x + in_proj(agg); LN; MLP; add ----
    x1 = (x + jnp.dot(agg, ri_w[...], preferred_element_type=jnp.float32)
          + ri_b[...])
    y = layer_norm(x1, rn_g, rn_b)
    y = gelu(jnp.dot(y.astype(jnp.bfloat16), fi_w[...],
                     preferred_element_type=jnp.float32) + fi_b[...])
    for j in range(n_hidden):
        w_ref = hid_refs[2 * j]
        b_ref = hid_refs[2 * j + 1]
        y = gelu(jnp.dot(y.astype(jnp.bfloat16), w_ref[...],
                         preferred_element_type=jnp.float32) + b_ref[...])
    y = jnp.dot(y.astype(jnp.bfloat16), fo_w[...],
                preferred_element_type=jnp.float32) + fo_b[...]
    o_ref[...] = (x1 + y).astype(o_ref.dtype)


def triplet_transformer_forward(params, triplet_h, src, dst, dist_attn,
                                path_attn, n_heads, n_ffn_dense_layers,
                                eps=1e-5):
    """Fused TripletTransformer forward. triplet_h: [N, d]; dist/path_attn: [E, H]."""
    N, d = triplet_h.shape
    H = n_heads
    scale = d ** (-0.5)
    n_hidden = n_ffn_dense_layers - 2

    # Fold the query scale into the Q columns of the QKV projection (free,
    # happens once outside the kernel).
    col_scale = jnp.concatenate([jnp.full((d,), scale, jnp.float32),
                                 jnp.ones((2 * d,), jnp.float32)])
    qkv_w = params["qkv"]["w"] * col_scale[None, :]
    qkv_b = params["qkv"]["b"] * col_scale

    # Per-edge attention bias scattered into a dense bf16 [H, N_dst, N_src]
    # tensor plus a single shared f32 adjacency mask (sparsity pattern is the
    # same for every head).
    edge_bias = (dist_attn + path_attn).astype(jnp.float32)     # [E, H]
    mask = jnp.zeros((N, N), jnp.float32).at[dst, src].set(1.0)
    bias = (jnp.full((H, N, N), -1e30, jnp.float32)
            .at[:, dst, src].set(edge_bias.T)
            .astype(jnp.bfloat16))

    def vec(p):   # (D,) -> (1, D) so every param ref is 2-D
        return p.reshape(1, -1)

    def w16(w):   # MXU weight operands in bf16 (f32 accumulation in-kernel)
        return w.astype(jnp.bfloat16)

    inputs = [triplet_h, bias, mask,
              vec(params["attn_norm"]["g"]), vec(params["attn_norm"]["b"]),
              w16(qkv_w), vec(qkv_b),
              w16(params["res_in"]["w"]), vec(params["res_in"]["b"]),
              vec(params["res_norm"]["g"]), vec(params["res_norm"]["b"]),
              w16(params["ffn_in"]["w"]), vec(params["ffn_in"]["b"])]
    for hid in params["ffn_hidden"]:
        inputs += [w16(hid["w"]), vec(hid["b"])]
    inputs += [w16(params["ffn_out"]["w"]), vec(params["ffn_out"]["b"])]

    def spec_for(a):
        if a.ndim == 3:
            return pl.BlockSpec(a.shape, lambda i: (0, 0, 0))
        return pl.BlockSpec(a.shape, lambda i: (0, 0))

    return pl.pallas_call(
        functools.partial(_triplet_transformer_kernel,
                          n_heads=H, n_hidden=n_hidden, eps=eps),
        out_shape=jax.ShapeDtypeStruct((N, d), jnp.float32),
        grid_spec=pltpu.PrefetchScalarGridSpec(
            num_scalar_prefetch=0,
            grid=(1,),
            in_specs=[spec_for(a) for a in inputs],
            out_specs=pl.BlockSpec((N, d), lambda i: (0, 0)),
            scratch_shapes=[pltpu.VMEM((N, d), jnp.float32)],
        ),
        compiler_params=pltpu.CompilerParams(
            dimension_semantics=("arbitrary",),
            vmem_limit_bytes=32 * 1024 * 1024),
    )(*inputs)


# ----------------------------------------------------------------------------
# Pure-JAX reference (edge-list / segment form of the DGL semantics)
# ----------------------------------------------------------------------------

def reference_forward(params, triplet_h, src, dst, dist_attn, path_attn,
                      n_heads, eps=1e-5):
    N, d = triplet_h.shape
    E = src.shape[0]
    dh = d // n_heads
    scale = d ** (-0.5)

    def ln(v, g, b):
        mu = v.mean(-1, keepdims=True)
        var = ((v - mu) ** 2).mean(-1, keepdims=True)
        return (v - mu) / jnp.sqrt(var + eps) * g + b

    def gelu(v):
        return 0.5 * v * (1.0 + lax.erf(v * (1.0 / math.sqrt(2.0))))

    h = ln(triplet_h, params["attn_norm"]["g"], params["attn_norm"]["b"])
    qkv = (h @ params["qkv"]["w"] + params["qkv"]["b"]).reshape(N, 3, n_heads, dh)
    q = qkv[:, 0] * scale
    k = qkv[:, 1]
    v = qkv[:, 2]                                             # [N, H, dh]

    node_attn = jnp.einsum("ehd,ehd->eh", q[src], k[dst])     # u_dot_v('Q','K')
    a = node_attn + dist_attn + path_attn                     # [E, H]
    m = jax.ops.segment_max(a, dst, num_segments=N)
    p = jnp.exp(a - m[dst])
    denom = jax.ops.segment_sum(p, dst, num_segments=N)
    sa = p / denom[dst]
    he = (v[src] * sa[:, :, None]).reshape(E, d)
    agg = jax.ops.segment_sum(he, dst, num_segments=N)        # [N, d]

    x1 = triplet_h + agg @ params["res_in"]["w"] + params["res_in"]["b"]
    y = ln(x1, params["res_norm"]["g"], params["res_norm"]["b"])
    y = gelu(y @ params["ffn_in"]["w"] + params["ffn_in"]["b"])
    for hid in params["ffn_hidden"]:
        y = gelu(y @ hid["w"] + hid["b"])
    y = y @ params["ffn_out"]["w"] + params["ffn_out"]["b"]
    return x1 + y


# ----------------------------------------------------------------------------
# Deterministic parameter init
# ----------------------------------------------------------------------------

def init_params(key, d, n_heads, n_ffn_dense_layers):
    dff = 4 * d
    keys = iter(jax.random.split(key, 64))

    def lin(din, dout):
        k1, k2 = next(keys), next(keys)
        return {"w": jax.random.normal(k1, (din, dout), jnp.float32) / math.sqrt(din),
                "b": 0.01 * jax.random.normal(k2, (dout,), jnp.float32)}

    def lnp(dim):
        return {"g": jnp.ones((dim,), jnp.float32),
                "b": jnp.zeros((dim,), jnp.float32)}

    return {
        "attn_norm": lnp(d),
        "qkv": lin(d, 3 * d),
        "res_in": lin(d, d),
        "res_norm": lnp(d),
        "ffn_in": lin(d, dff),
        "ffn_hidden": [lin(dff, dff) for _ in range(n_ffn_dense_layers - 2)],
        "ffn_out": lin(dff, d),
    }


# ----------------------------------------------------------------------------
# Synthetic test
# ----------------------------------------------------------------------------

if __name__ == "__main__":
    d_feats = 32
    n_heads = 4
    n_ffn_dense_layers = 4
    N = 16

    key = jax.random.PRNGKey(0)
    kp, kx, kd, kpa = jax.random.split(key, 4)
    params = init_params(kp, d_feats, n_heads, n_ffn_dense_layers)

    # simple graph: every node receives edges from offsets {0 (self-loop), 1, 2}
    offsets = [0, 1, 2]
    dst = jnp.concatenate([jnp.arange(N, dtype=jnp.int32) for _ in offsets])
    src = jnp.concatenate([(jnp.arange(N, dtype=jnp.int32) + o) % N for o in offsets])
    E = int(dst.shape[0])  # 48

    triplet_h = jax.random.normal(kx, (N, d_feats), jnp.float32)
    dist_attn = 0.5 * jax.random.normal(kd, (E, n_heads), jnp.float32)
    path_attn = 0.5 * jax.random.normal(kpa, (E, n_heads), jnp.float32)

    out = triplet_transformer_forward(params, triplet_h, src, dst, dist_attn,
                                      path_attn, n_heads, n_ffn_dense_layers)
    out = jax.block_until_ready(out)
    assert out.shape == (N, d_feats)
    assert bool(jnp.all(jnp.isfinite(out)))

    ref = reference_forward(params, triplet_h, src, dst, dist_attn, path_attn,
                            n_heads)
    err = float(jnp.max(jnp.abs(out - ref)))
    tol = 5e-2 * max(1.0, float(jnp.max(jnp.abs(ref))))
    assert err < tol, f"max abs err {err} (tol {tol})"

    print("KERNEL_OK")
</pallas_src>

<mosaic_0001>
module attributes {stable_mosaic.version = 11 : i64} {
  func.func @_triplet_transformer_kernel(%arg0: i32, %arg1: memref<16x32xf32, #tpu.memory_space<vmem>>, %arg2: memref<4x16x16xbf16, #tpu.memory_space<vmem>>, %arg3: memref<16x16xf32, #tpu.memory_space<vmem>>, %arg4: memref<1x32xf32, #tpu.memory_space<vmem>>, %arg5: memref<1x32xf32, #tpu.memory_space<vmem>>, %arg6: memref<32x96xbf16, #tpu.memory_space<vmem>>, %arg7: memref<1x96xf32, #tpu.memory_space<vmem>>, %arg8: memref<32x32xbf16, #tpu.memory_space<vmem>>, %arg9: memref<1x32xf32, #tpu.memory_space<vmem>>, %arg10: memref<1x32xf32, #tpu.memory_space<vmem>>, %arg11: memref<1x32xf32, #tpu.memory_space<vmem>>, %arg12: memref<32x128xbf16, #tpu.memory_space<vmem>>, %arg13: memref<1x128xf32, #tpu.memory_space<vmem>>, %arg14: memref<128x128xbf16, #tpu.memory_space<vmem>>, %arg15: memref<1x128xf32, #tpu.memory_space<vmem>>, %arg16: memref<128x128xbf16, #tpu.memory_space<vmem>>, %arg17: memref<1x128xf32, #tpu.memory_space<vmem>>, %arg18: memref<128x32xbf16, #tpu.memory_space<vmem>>, %arg19: memref<1x32xf32, #tpu.memory_space<vmem>>, %arg20: memref<16x32xf32, #tpu.memory_space<vmem>>, %arg21: memref<16x32xf32, #tpu.memory_space<vmem>>) attributes {dimension_semantics = [#tpu.dimension_semantics<arbitrary>], iteration_bounds = array<i64: 1>, scalar_prefetch = 0 : i64, scratch_operands = 1 : i64, tpu.core_type = #tpu.core_type<tc>, window_params = [{pipeline_mode = #tpu.pipeline_mode<synchronous>, transform_indices = @transform_0, window_bounds = array<i64: 16, 32>}, {pipeline_mode = #tpu.pipeline_mode<synchronous>, transform_indices = @transform_1, window_bounds = array<i64: 4, 16, 16>}, {pipeline_mode = #tpu.pipeline_mode<synchronous>, transform_indices = @transform_2, window_bounds = array<i64: 16, 16>}, {pipeline_mode = #tpu.pipeline_mode<synchronous>, transform_indices = @transform_3, window_bounds = array<i64: 1, 32>}, {pipeline_mode = #tpu.pipeline_mode<synchronous>, transform_indices = @transform_4, window_bounds = array<i64: 1, 32>}, {pipeline_mode = #tpu.pipeline_mode<synchronous>, transform_indices = @transform_5, window_bounds = array<i64: 32, 96>}, {pipeline_mode = #tpu.pipeline_mode<synchronous>, transform_indices = @transform_6, window_bounds = array<i64: 1, 96>}, {pipeline_mode = #tpu.pipeline_mode<synchronous>, transform_indices = @transform_7, window_bounds = array<i64: 32, 32>}, {pipeline_mode = #tpu.pipeline_mode<synchronous>, transform_indices = @transform_8, window_bounds = array<i64: 1, 32>}, {pipeline_mode = #tpu.pipeline_mode<synchronous>, transform_indices = @transform_9, window_bounds = array<i64: 1, 32>}, {pipeline_mode = #tpu.pipeline_mode<synchronous>, transform_indices = @transform_10, window_bounds = array<i64: 1, 32>}, {pipeline_mode = #tpu.pipeline_mode<synchronous>, transform_indices = @transform_11, window_bounds = array<i64: 32, 128>}, {pipeline_mode = #tpu.pipeline_mode<synchronous>, transform_indices = @transform_12, window_bounds = array<i64: 1, 128>}, {pipeline_mode = #tpu.pipeline_mode<synchronous>, transform_indices = @transform_13, window_bounds = array<i64: 128, 128>}, {pipeline_mode = #tpu.pipeline_mode<synchronous>, transform_indices = @transform_14, window_bounds = array<i64: 1, 128>}, {pipeline_mode = #tpu.pipeline_mode<synchronous>, transform_indices = @transform_15, window_bounds = array<i64: 128, 128>}, {pipeline_mode = #tpu.pipeline_mode<synchronous>, transform_indices = @transform_16, window_bounds = array<i64: 1, 128>}, {pipeline_mode = #tpu.pipeline_mode<synchronous>, transform_indices = @transform_17, window_bounds = array<i64: 128, 32>}, {pipeline_mode = #tpu.pipeline_mode<synchronous>, transform_indices = @transform_18, window_bounds = array<i64: 1, 32>}, {pipeline_mode = #tpu.pipeline_mode<synchronous>, transform_indices = @transform_19, window_bounds = array<i64: 16, 32>}]} {
    %c0 = arith.constant 0 : index
    %c0_0 = arith.constant 0 : index
    %0 = vector.load %arg1[%c0, %c0_0] : memref<16x32xf32, #tpu.memory_space<vmem>>, vector<16x32xf32>
    %cst = arith.constant dense<0.000000e+00> : vector<16xf32>
    %1 = vector.multi_reduction <add>, %0, %cst [1] : vector<16x32xf32> to vector<16xf32>
    %2 = vector.shape_cast %1 : vector<16xf32> to vector<16x1xf32>
    %cst_1 = arith.constant 3.200000e+01 : f32
    %3 = vector.broadcast %cst_1 : f32 to vector<16x1xf32>
    %4 = arith.divf %2, %3 : vector<16x1xf32>
    %5 = vector.broadcast %4 : vector<16x1xf32> to vector<16x32xf32>
    %6 = arith.subf %0, %5 : vector<16x32xf32>
    %7 = arith.mulf %6, %6 : vector<16x32xf32>
    %cst_2 = arith.constant dense<0.000000e+00> : vector<16xf32>
    %8 = vector.multi_reduction <add>, %7, %cst_2 [1] : vector<16x32xf32> to vector<16xf32>
    %9 = vector.shape_cast %8 : vector<16xf32> to vector<16x1xf32>
    %cst_3 = arith.constant 3.200000e+01 : f32
    %10 = vector.broadcast %cst_3 : f32 to vector<16x1xf32>
    %11 = arith.divf %9, %10 : vector<16x1xf32>
    %cst_4 = arith.constant 9.99999974E-6 : f32
    %12 = vector.broadcast %cst_4 : f32 to vector<16x1xf32>
    %13 = arith.addf %11, %12 : vector<16x1xf32>
    %14 = math.rsqrt %13 : vector<16x1xf32>
    %15 = vector.broadcast %14 : vector<16x1xf32> to vector<16x32xf32>
    %16 = arith.mulf %6, %15 : vector<16x32xf32>
    %c0_5 = arith.constant 0 : index
    %c0_6 = arith.constant 0 : index
    %17 = vector.load %arg4[%c0_5, %c0_6] : memref<1x32xf32, #tpu.memory_space<vmem>>, vector<1x32xf32>
    %18 = vector.broadcast %17 : vector<1x32xf32> to vector<16x32xf32>
    %19 = arith.mulf %16, %18 : vector<16x32xf32>
    %c0_7 = arith.constant 0 : index
    %c0_8 = arith.constant 0 : index
    %20 = vector.load %arg5[%c0_7, %c0_8] : memref<1x32xf32, #tpu.memory_space<vmem>>, vector<1x32xf32>
    %21 = vector.broadcast %20 : vector<1x32xf32> to vector<16x32xf32>
    %22 = arith.addf %19, %21 : vector<16x32xf32>
    %23 = arith.truncf %22 : vector<16x32xf32> to vector<16x32xbf16>
    %c0_9 = arith.constant 0 : index
    %c0_10 = arith.constant 0 : index
    %24 = vector.load %arg6[%c0_9, %c0_10] : memref<32x96xbf16, #tpu.memory_space<vmem>>, vector<32x96xbf16>
    %cst_11 = arith.constant dense<0.000000e+00> : vector<16x96xf32>
    %25 = tpu.matmul %23, %24, %cst_11 {dimension_numbers = #tpu.dot_dimension_numbers<[1], [0], [0], [1], [0, 0, 1, 1], [], []>} : vector<16x32xbf16>, vector<32x96xbf16>, vector<16x96xf32> -> vector<16x96xf32>
    %c0_12 = arith.constant 0 : index
    %c0_13 = arith.constant 0 : index
    %26 = vector.load %arg7[%c0_12, %c0_13] : memref<1x96xf32, #tpu.memory_space<vmem>>, vector<1x96xf32>
    %27 = vector.broadcast %26 : vector<1x96xf32> to vector<16x96xf32>
    %28 = arith.addf %25, %27 : vector<16x96xf32>
    %c0_14 = arith.constant 0 : index
    %c0_15 = arith.constant 0 : index
    %29 = vector.load %arg3[%c0_14, %c0_15] : memref<16x16xf32, #tpu.memory_space<vmem>>, vector<16x16xf32>
    %30 = vector.extract_strided_slice %28 {offsets = [0, 0], sizes = [16, 8], strides = [1, 1]} : vector<16x96xf32> to vector<16x8xf32>
    %31 = vector.extract_strided_slice %28 {offsets = [0, 32], sizes = [16, 8], strides = [1, 1]} : vector<16x96xf32> to vector<16x8xf32>
    %32 = vector.extract_strided_slice %28 {offsets = [0, 64], sizes = [16, 8], strides = [1, 1]} : vector<16x96xf32> to vector<16x8xf32>
    %33 = arith.truncf %32 : vector<16x8xf32> to vector<16x8xbf16>
    %cst_16 = arith.constant dense<0.000000e+00> : vector<16x16xf32>
    %34 = tpu.matmul %31, %30, %cst_16 {dimension_numbers = #tpu.dot_dimension_numbers<[1], [1], [0], [0], [0, 0, 1, 0], [], []>} : vector<16x8xf32>, vector<16x8xf32>, vector<16x16xf32> -> vector<16x16xf32>
    %c0_17 = arith.constant 0 : index
    %c0_18 = arith.constant 0 : index
    %c0_19 = arith.constant 0 : index
    %35 = vector.load %arg2[%c0_17, %c0_18, %c0_19] : memref<4x16x16xbf16, #tpu.memory_space<vmem>>, vector<1x16x16xbf16>
    %36 = vector.shape_cast %35 : vector<1x16x16xbf16> to vector<16x16xbf16>
    %37 = arith.extf %36 : vector<16x16xbf16> to vector<16x16xf32>
    %38 = arith.addf %34, %37 : vector<16x16xf32>
    %cst_20 = arith.constant dense<0xFF800000> : vector<16xf32>
    %39 = vector.multi_reduction <maximumf>, %38, %cst_20 [1] : vector<16x16xf32> to vector<16xf32>
    %40 = vector.shape_cast %39 : vector<16xf32> to vector<16x1xf32>
    %41 = vector.broadcast %40 : vector<16x1xf32> to vector<16x16xf32>
    %42 = arith.subf %38, %41 : vector<16x16xf32>
    %43 = math.exp %42 : vector<16x16xf32>
    %44 = arith.mulf %43, %29 : vector<16x16xf32>
    %cst_21 = arith.constant dense<0.000000e+00> : vector<16xf32>
    %45 = vector.multi_reduction <add>, %44, %cst_21 [1] : vector<16x16xf32> to vector<16xf32>
    %46 = vector.shape_cast %45 : vector<16xf32> to vector<16x1xf32>
    %cst_22 = arith.constant 0.000000e+00 : f32
    %47 = vector.broadcast %cst_22 : f32 to vector<16x1xf32>
    %48 = arith.cmpf ogt, %46, %47 : vector<16x1xf32>
    %cst_23 = arith.constant 1.000000e+00 : f32
    %49 = vector.broadcast %cst_23 : f32 to vector<16x1xf32>
    %50 = arith.select %48, %46, %49 : vector<16x1xi1>, vector<16x1xf32>
    %51 = tpu.reciprocal %50 {approx = true} : vector<16x1xf32> -> vector<16x1xf32>
    %52 = vector.broadcast %51 : vector<16x1xf32> to vector<16x16xf32>
    %53 = arith.mulf %44, %52 : vector<16x16xf32>
    %54 = arith.truncf %53 : vector<16x16xf32> to vector<16x16xbf16>
    %cst_24 = arith.constant dense<0.000000e+00> : vector<16x8xf32>
    %55 = tpu.matmul %54, %33, %cst_24 {dimension_numbers = #tpu.dot_dimension_numbers<[1], [0], [0], [1], [0, 0, 1, 1], [], []>} : vector<16x16xbf16>, vector<16x8xbf16>, vector<16x8xf32> -> vector<16x8xf32>
    %c0_25 = arith.constant 0 : index
    %c0_26 = arith.constant 0 : index
    %56 = vector.load %arg21[%c0_25, %c0_26] : memref<16x32xf32, #tpu.memory_space<vmem>>, vector<16x8xf32>
    tpu.vector_store %arg21[%c0_25, %c0_26], %55 {strides = array<i32>} : memref<16x32xf32, #tpu.memory_space<vmem>>, vector<16x8xf32>,
    %57 = vector.extract_strided_slice %28 {offsets = [0, 8], sizes = [16, 8], strides = [1, 1]} : vector<16x96xf32> to vector<16x8xf32>
    %58 = vector.extract_strided_slice %28 {offsets = [0, 40], sizes = [16, 8], strides = [1, 1]} : vector<16x96xf32> to vector<16x8xf32>
    %59 = vector.extract_strided_slice %28 {offsets = [0, 72], sizes = [16, 8], strides = [1, 1]} : vector<16x96xf32> to vector<16x8xf32>
    %60 = arith.truncf %59 : vector<16x8xf32> to vector<16x8xbf16>
    %cst_27 = arith.constant dense<0.000000e+00> : vector<16x16xf32>
    %61 = tpu.matmul %58, %57, %cst_27 {dimension_numbers = #tpu.dot_dimension_numbers<[1], [1], [0], [0], [0, 0, 1, 0], [], []>} : vector<16x8xf32>, vector<16x8xf32>, vector<16x16xf32> -> vector<16x16xf32>
    %c1 = arith.constant 1 : index
    %c0_28 = arith.constant 0 : index
    %c0_29 = arith.constant 0 : index
    %62 = vector.load %arg2[%c1, %c0_28, %c0_29] : memref<4x16x16xbf16, #tpu.memory_space<vmem>>, vector<1x16x16xbf16>
    %63 = vector.shape_cast %62 : vector<1x16x16xbf16> to vector<16x16xbf16>
    %64 = arith.extf %63 : vector<16x16xbf16> to vector<16x16xf32>
    %65 = arith.addf %61, %64 : vector<16x16xf32>
    %cst_30 = arith.constant dense<0xFF800000> : vector<16xf32>
    %66 = vector.multi_reduction <maximumf>, %65, %cst_30 [1] : vector<16x16xf32> to vector<16xf32>
    %67 = vector.shape_cast %66 : vector<16xf32> to vector<16x1xf32>
    %68 = vector.broadcast %67 : vector<16x1xf32> to vector<16x16xf32>
    %69 = arith.subf %65, %68 : vector<16x16xf32>
    %70 = math.exp %69 : vector<16x16xf32>
    %71 = arith.mulf %70, %29 : vector<16x16xf32>
    %cst_31 = arith.constant dense<0.000000e+00> : vector<16xf32>
    %72 = vector.multi_reduction <add>, %71, %cst_31 [1] : vector<16x16xf32> to vector<16xf32>
    %73 = vector.shape_cast %72 : vector<16xf32> to vector<16x1xf32>
    %cst_32 = arith.constant 0.000000e+00 : f32
    %74 = vector.broadcast %cst_32 : f32 to vector<16x1xf32>
    %75 = arith.cmpf ogt, %73, %74 : vector<16x1xf32>
    %cst_33 = arith.constant 1.000000e+00 : f32
    %76 = vector.broadcast %cst_33 : f32 to vector<16x1xf32>
    %77 = arith.select %75, %73, %76 : vector<16x1xi1>, vector<16x1xf32>
    %78 = tpu.reciprocal %77 {approx = true} : vector<16x1xf32> -> vector<16x1xf32>
    %79 = vector.broadcast %78 : vector<16x1xf32> to vector<16x16xf32>
    %80 = arith.mulf %71, %79 : vector<16x16xf32>
    %81 = arith.truncf %80 : vector<16x16xf32> to vector<16x16xbf16>
    %cst_34 = arith.constant dense<0.000000e+00> : vector<16x8xf32>
    %82 = tpu.matmul %81, %60, %cst_34 {dimension_numbers = #tpu.dot_dimension_numbers<[1], [0], [0], [1], [0, 0, 1, 1], [], []>} : vector<16x16xbf16>, vector<16x8xbf16>, vector<16x8xf32> -> vector<16x8xf32>
    %c0_35 = arith.constant 0 : index
    %c8 = arith.constant 8 : index
    %83 = vector.load %arg21[%c0_35, %c8] : memref<16x32xf32, #tpu.memory_space<vmem>>, vector<16x8xf32>
    tpu.vector_store %arg21[%c0_35, %c8], %82 {strides = array<i32>} : memref<16x32xf32, #tpu.memory_space<vmem>>, vector<16x8xf32>,
    %84 = vector.extract_strided_slice %28 {offsets = [0, 16], sizes = [16, 8], strides = [1, 1]} : vector<16x96xf32> to vector<16x8xf32>
    %85 = vector.extract_strided_slice %28 {offsets = [0, 48], sizes = [16, 8], strides = [1, 1]} : vector<16x96xf32> to vector<16x8xf32>
    %86 = vector.extract_strided_slice %28 {offsets = [0, 80], sizes = [16, 8], strides = [1, 1]} : vector<16x96xf32> to vector<16x8xf32>
    %87 = arith.truncf %86 : vector<16x8xf32> to vector<16x8xbf16>
    %cst_36 = arith.constant dense<0.000000e+00> : vector<16x16xf32>
    %88 = tpu.matmul %85, %84, %cst_36 {dimension_numbers = #tpu.dot_dimension_numbers<[1], [1], [0], [0], [0, 0, 1, 0], [], []>} : vector<16x8xf32>, vector<16x8xf32>, vector<16x16xf32> -> vector<16x16xf32>
    %c2 = arith.constant 2 : index
    %c0_37 = arith.constant 0 : index
    %c0_38 = arith.constant 0 : index
    %89 = vector.load %arg2[%c2, %c0_37, %c0_38] : memref<4x16x16xbf16, #tpu.memory_space<vmem>>, vector<1x16x16xbf16>
    %90 = vector.shape_cast %89 : vector<1x16x16xbf16> to vector<16x16xbf16>
    %91 = arith.extf %90 : vector<16x16xbf16> to vector<16x16xf32>
    %92 = arith.addf %88, %91 : vector<16x16xf32>
    %cst_39 = arith.constant dense<0xFF800000> : vector<16xf32>
    %93 = vector.multi_reduction <maximumf>, %92, %cst_39 [1] : vector<16x16xf32> to vector<16xf32>
    %94 = vector.shape_cast %93 : vector<16xf32> to vector<16x1xf32>
    %95 = vector.broadcast %94 : vector<16x1xf32> to vector<16x16xf32>
    %96 = arith.subf %92, %95 : vector<16x16xf32>
    %97 = math.exp %96 : vector<16x16xf32>
    %98 = arith.mulf %97, %29 : vector<16x16xf32>
    %cst_40 = arith.constant dense<0.000000e+00> : vector<16xf32>
    %99 = vector.multi_reduction <add>, %98, %cst_40 [1] : vector<16x16xf32> to vector<16xf32>
    %100 = vector.shape_cast %99 : vector<16xf32> to vector<16x1xf32>
    %cst_41 = arith.constant 0.000000e+00 : f32
    %101 = vector.broadcast %cst_41 : f32 to vector<16x1xf32>
    %102 = arith.cmpf ogt, %100, %101 : vector<16x1xf32>
    %cst_42 = arith.constant 1.000000e+00 : f32
    %103 = vector.broadcast %cst_42 : f32 to vector<16x1xf32>
    %104 = arith.select %102, %100, %103 : vector<16x1xi1>, vector<16x1xf32>
    %105 = tpu.reciprocal %104 {approx = true} : vector<16x1xf32> -> vector<16x1xf32>
    %106 = vector.broadcast %105 : vector<16x1xf32> to vector<16x16xf32>
    %107 = arith.mulf %98, %106 : vector<16x16xf32>
    %108 = arith.truncf %107 : vector<16x16xf32> to vector<16x16xbf16>
    %cst_43 = arith.constant dense<0.000000e+00> : vector<16x8xf32>
    %109 = tpu.matmul %108, %87, %cst_43 {dimension_numbers = #tpu.dot_dimension_numbers<[1], [0], [0], [1], [0, 0, 1, 1], [], []>} : vector<16x16xbf16>, vector<16x8xbf16>, vector<16x8xf32> -> vector<16x8xf32>
    %c0_44 = arith.constant 0 : index
    %c16 = arith.constant 16 : index
    %110 = vector.load %arg21[%c0_44, %c16] : memref<16x32xf32, #tpu.memory_space<vmem>>, vector<16x8xf32>
    tpu.vector_store %arg21[%c0_44, %c16], %109 {strides = array<i32>} : memref<16x32xf32, #tpu.memory_space<vmem>>, vector<16x8xf32>,
    %111 = vector.extract_strided_slice %28 {offsets = [0, 24], sizes = [16, 8], strides = [1, 1]} : vector<16x96xf32> to vector<16x8xf32>
    %112 = vector.extract_strided_slice %28 {offsets = [0, 56], sizes = [16, 8], strides = [1, 1]} : vector<16x96xf32> to vector<16x8xf32>
    %113 = vector.extract_strided_slice %28 {offsets = [0, 88], sizes = [16, 8], strides = [1, 1]} : vector<16x96xf32> to vector<16x8xf32>
    %114 = arith.truncf %113 : vector<16x8xf32> to vector<16x8xbf16>
    %cst_45 = arith.constant dense<0.000000e+00> : vector<16x16xf32>
    %115 = tpu.matmul %112, %111, %cst_45 {dimension_numbers = #tpu.dot_dimension_numbers<[1], [1], [0], [0], [0, 0, 1, 0], [], []>} : vector<16x8xf32>, vector<16x8xf32>, vector<16x16xf32> -> vector<16x16xf32>
    %c3 = arith.constant 3 : index
    %c0_46 = arith.constant 0 : index
    %c0_47 = arith.constant 0 : index
    %116 = vector.load %arg2[%c3, %c0_46, %c0_47] : memref<4x16x16xbf16, #tpu.memory_space<vmem>>, vector<1x16x16xbf16>
    %117 = vector.shape_cast %116 : vector<1x16x16xbf16> to vector<16x16xbf16>
    %118 = arith.extf %117 : vector<16x16xbf16> to vector<16x16xf32>
    %119 = arith.addf %115, %118 : vector<16x16xf32>
    %cst_48 = arith.constant dense<0xFF800000> : vector<16xf32>
    %120 = vector.multi_reduction <maximumf>, %119, %cst_48 [1] : vector<16x16xf32> to vector<16xf32>
    %121 = vector.shape_cast %120 : vector<16xf32> to vector<16x1xf32>
    %122 = vector.broadcast %121 : vector<16x1xf32> to vector<16x16xf32>
    %123 = arith.subf %119, %122 : vector<16x16xf32>
    %124 = math.exp %123 : vector<16x16xf32>
    %125 = arith.mulf %124, %29 : vector<16x16xf32>
    %cst_49 = arith.constant dense<0.000000e+00> : vector<16xf32>
    %126 = vector.multi_reduction <add>, %125, %cst_49 [1] : vector<16x16xf32> to vector<16xf32>
    %127 = vector.shape_cast %126 : vector<16xf32> to vector<16x1xf32>
    %cst_50 = arith.constant 0.000000e+00 : f32
    %128 = vector.broadcast %cst_50 : f32 to vector<16x1xf32>
    %129 = arith.cmpf ogt, %127, %128 : vector<16x1xf32>
    %cst_51 = arith.constant 1.000000e+00 : f32
    %130 = vector.broadcast %cst_51 : f32 to vector<16x1xf32>
    %131 = arith.select %129, %127, %130 : vector<16x1xi1>, vector<16x1xf32>
    %132 = tpu.reciprocal %131 {approx = true} : vector<16x1xf32> -> vector<16x1xf32>
    %133 = vector.broadcast %132 : vector<16x1xf32> to vector<16x16xf32>
    %134 = arith.mulf %125, %133 : vector<16x16xf32>
    %135 = arith.truncf %134 : vector<16x16xf32> to vector<16x16xbf16>
    %cst_52 = arith.constant dense<0.000000e+00> : vector<16x8xf32>
    %136 = tpu.matmul %135, %114, %cst_52 {dimension_numbers = #tpu.dot_dimension_numbers<[1], [0], [0], [1], [0, 0, 1, 1], [], []>} : vector<16x16xbf16>, vector<16x8xbf16>, vector<16x8xf32> -> vector<16x8xf32>
    %c0_53 = arith.constant 0 : index
    %c24 = arith.constant 24 : index
    %137 = vector.load %arg21[%c0_53, %c24] : memref<16x32xf32, #tpu.memory_space<vmem>>, vector<16x8xf32>
    tpu.vector_store %arg21[%c0_53, %c24], %136 {strides = array<i32>} : memref<16x32xf32, #tpu.memory_space<vmem>>, vector<16x8xf32>,
    %c0_54 = arith.constant 0 : index
    %c0_55 = arith.constant 0 : index
    %138 = vector.load %arg21[%c0_54, %c0_55] : memref<16x32xf32, #tpu.memory_space<vmem>>, vector<16x32xf32>
    %139 = arith.truncf %138 : vector<16x32xf32> to vector<16x32xbf16>
    %c0_56 = arith.constant 0 : index
    %c0_57 = arith.constant 0 : index
    %140 = vector.load %arg8[%c0_56, %c0_57] : memref<32x32xbf16, #tpu.memory_space<vmem>>, vector<32x32xbf16>
    %cst_58 = arith.constant dense<0.000000e+00> : vector<16x32xf32>
    %141 = tpu.matmul %139, %140, %cst_58 {dimension_numbers = #tpu.dot_dimension_numbers<[1], [0], [0], [1], [0, 0, 1, 1], [], []>} : vector<16x32xbf16>, vector<32x32xbf16>, vector<16x32xf32> -> vector<16x32xf32>
    %142 = arith.addf %0, %141 : vector<16x32xf32>
    %c0_59 = arith.constant 0 : index
    %c0_60 = arith.constant 0 : index
    %143 = vector.load %arg9[%c0_59, %c0_60] : memref<1x32xf32, #tpu.memory_space<vmem>>, vector<1x32xf32>
    %144 = vector.broadcast %143 : vector<1x32xf32> to vector<16x32xf32>
    %145 = arith.addf %142, %144 : vector<16x32xf32>
    %cst_61 = arith.constant dense<0.000000e+00> : vector<16xf32>
    %146 = vector.multi_reduction <add>, %145, %cst_61 [1] : vector<16x32xf32> to vector<16xf32>
    %147 = vector.shape_cast %146 : vector<16xf32> to vector<16x1xf32>
    %cst_62 = arith.constant 3.200000e+01 : f32
    %148 = vector.broadcast %cst_62 : f32 to vector<16x1xf32>
    %149 = arith.divf %147, %148 : vector<16x1xf32>
    %150 = vector.broadcast %149 : vector<16x1xf32> to vector<16x32xf32>
    %151 = arith.subf %145, %150 : vector<16x32xf32>
    %152 = arith.mulf %151, %151 : vector<16x32xf32>
    %cst_63 = arith.constant dense<0.000000e+00> : vector<16xf32>
    %153 = vector.multi_reduction <add>, %152, %cst_63 [1] : vector<16x32xf32> to vector<16xf32>
    %154 = vector.shape_cast %153 : vector<16xf32> to vector<16x1xf32>
    %cst_64 = arith.constant 3.200000e+01 : f32
    %155 = vector.broadcast %cst_64 : f32 to vector<16x1xf32>
    %156 = arith.divf %154, %155 : vector<16x1xf32>
    %cst_65 = arith.constant 9.99999974E-6 : f32
    %157 = vector.broadcast %cst_65 : f32 to vector<16x1xf32>
    %158 = arith.addf %156, %157 : vector<16x1xf32>
    %159 = math.rsqrt %158 : vector<16x1xf32>
    %160 = vector.broadcast %159 : vector<16x1xf32> to vector<16x32xf32>
    %161 = arith.mulf %151, %160 : vector<16x32xf32>
    %c0_66 = arith.constant 0 : index
    %c0_67 = arith.constant 0 : index
    %162 = vector.load %arg10[%c0_66, %c0_67] : memref<1x32xf32, #tpu.memory_space<vmem>>, vector<1x32xf32>
    %163 = vector.broadcast %162 : vector<1x32xf32> to vector<16x32xf32>
    %164 = arith.mulf %161, %163 : vector<16x32xf32>
    %c0_68 = arith.constant 0 : index
    %c0_69 = arith.constant 0 : index
    %165 = vector.load %arg11[%c0_68, %c0_69] : memref<1x32xf32, #tpu.memory_space<vmem>>, vector<1x32xf32>
    %166 = vector.broadcast %165 : vector<1x32xf32> to vector<16x32xf32>
    %167 = arith.addf %164, %166 : vector<16x32xf32>
    %168 = arith.truncf %167 : vector<16x32xf32> to vector<16x32xbf16>
    %c0_70 = arith.constant 0 : index
    %c0_71 = arith.constant 0 : index
    %169 = vector.load %arg12[%c0_70, %c0_71] : memref<32x128xbf16, #tpu.memory_space<vmem>>, vector<32x128xbf16>
    %cst_72 = arith.constant dense<0.000000e+00> : vector<16x128xf32>
    %170 = tpu.matmul %168, %169, %cst_72 {dimension_numbers = #tpu.dot_dimension_numbers<[1], [0], [0], [1], [0, 0, 1, 1], [], []>} : vector<16x32xbf16>, vector<32x128xbf16>, vector<16x128xf32> -> vector<16x128xf32>
    %c0_73 = arith.constant 0 : index
    %c0_74 = arith.constant 0 : index
    %171 = vector.load %arg13[%c0_73, %c0_74] : memref<1x128xf32, #tpu.memory_space<vmem>>, vector<1x128xf32>
    %172 = vector.broadcast %171 : vector<1x128xf32> to vector<16x128xf32>
    %173 = arith.addf %170, %172 : vector<16x128xf32>
    %cst_75 = arith.constant 5.000000e-01 : f32
    %174 = vector.broadcast %cst_75 : f32 to vector<16x128xf32>
    %175 = arith.mulf %174, %173 : vector<16x128xf32>
    %cst_76 = arith.constant 0.707106769 : f32
    %176 = vector.broadcast %cst_76 : f32 to vector<16x128xf32>
    %177 = arith.mulf %173, %176 : vector<16x128xf32>
    %178 = math.erf %177 : vector<16x128xf32>
    %cst_77 = arith.constant 1.000000e+00 : f32
    %179 = vector.broadcast %cst_77 : f32 to vector<16x128xf32>
    %180 = arith.addf %179, %178 : vector<16x128xf32>
    %181 = arith.mulf %175, %180 : vector<16x128xf32>
    %182 = arith.truncf %181 : vector<16x128xf32> to vector<16x128xbf16>
    %c0_78 = arith.constant 0 : index
    %c0_79 = arith.constant 0 : index
    %183 = vector.load %arg14[%c0_78, %c0_79] : memref<128x128xbf16, #tpu.memory_space<vmem>>, vector<128x128xbf16>
    %cst_80 = arith.constant dense<0.000000e+00> : vector<16x128xf32>
    %184 = tpu.matmul %182, %183, %cst_80 {dimension_numbers = #tpu.dot_dimension_numbers<[1], [0], [0], [1], [0, 0, 1, 1], [], []>} : vector<16x128xbf16>, vector<128x128xbf16>, vector<16x128xf32> -> vector<16x128xf32>
    %c0_81 = arith.constant 0 : index
    %c0_82 = arith.constant 0 : index
    %185 = vector.load %arg15[%c0_81, %c0_82] : memref<1x128xf32, #tpu.memory_space<vmem>>, vector<1x128xf32>
    %186 = vector.broadcast %185 : vector<1x128xf32> to vector<16x128xf32>
    %187 = arith.addf %184, %186 : vector<16x128xf32>
    %cst_83 = arith.constant 5.000000e-01 : f32
    %188 = vector.broadcast %cst_83 : f32 to vector<16x128xf32>
    %189 = arith.mulf %188, %187 : vector<16x128xf32>
    %cst_84 = arith.constant 0.707106769 : f32
    %190 = vector.broadcast %cst_84 : f32 to vector<16x128xf32>
    %191 = arith.mulf %187, %190 : vector<16x128xf32>
    %192 = math.erf %191 : vector<16x128xf32>
    %cst_85 = arith.constant 1.000000e+00 : f32
    %193 = vector.broadcast %cst_85 : f32 to vector<16x128xf32>
    %194 = arith.addf %193, %192 : vector<16x128xf32>
    %195 = arith.mulf %189, %194 : vector<16x128xf32>
    %196 = arith.truncf %195 : vector<16x128xf32> to vector<16x128xbf16>
    %c0_86 = arith.constant 0 : index
    %c0_87 = arith.constant 0 : index
    %197 = vector.load %arg16[%c0_86, %c0_87] : memref<128x128xbf16, #tpu.memory_space<vmem>>, vector<128x128xbf16>
    %cst_88 = arith.constant dense<0.000000e+00> : vector<16x128xf32>
    %198 = tpu.matmul %196, %197, %cst_88 {dimension_numbers = #tpu.dot_dimension_numbers<[1], [0], [0], [1], [0, 0, 1, 1], [], []>} : vector<16x128xbf16>, vector<128x128xbf16>, vector<16x128xf32> -> vector<16x128xf32>
    %c0_89 = arith.constant 0 : index
    %c0_90 = arith.constant 0 : index
    %199 = vector.load %arg17[%c0_89, %c0_90] : memref<1x128xf32, #tpu.memory_space<vmem>>, vector<1x128xf32>
    %200 = vector.broadcast %199 : vector<1x128xf32> to vector<16x128xf32>
    %201 = arith.addf %198, %200 : vector<16x128xf32>
    %cst_91 = arith.constant 5.000000e-01 : f32
    %202 = vector.broadcast %cst_91 : f32 to vector<16x128xf32>
    %203 = arith.mulf %202, %201 : vector<16x128xf32>
    %cst_92 = arith.constant 0.707106769 : f32
    %204 = vector.broadcast %cst_92 : f32 to vector<16x128xf32>
    %205 = arith.mulf %201, %204 : vector<16x128xf32>
    %206 = math.erf %205 : vector<16x128xf32>
    %cst_93 = arith.constant 1.000000e+00 : f32
    %207 = vector.broadcast %cst_93 : f32 to vector<16x128xf32>
    %208 = arith.addf %207, %206 : vector<16x128xf32>
    %209 = arith.mulf %203, %208 : vector<16x128xf32>
    %210 = arith.truncf %209 : vector<16x128xf32> to vector<16x128xbf16>
    %c0_94 = arith.constant 0 : index
    %c0_95 = arith.constant 0 : index
    %211 = vector.load %arg18[%c0_94, %c0_95] : memref<128x32xbf16, #tpu.memory_space<vmem>>, vector<128x32xbf16>
    %cst_96 = arith.constant dense<0.000000e+00> : vector<16x32xf32>
    %212 = tpu.matmul %210, %211, %cst_96 {dimension_numbers = #tpu.dot_dimension_numbers<[1], [0], [0], [1], [0, 0, 1, 1], [], []>} : vector<16x128xbf16>, vector<128x32xbf16>, vector<16x32xf32> -> vector<16x32xf32>
    %c0_97 = arith.constant 0 : index
    %c0_98 = arith.constant 0 : index
    %213 = vector.load %arg19[%c0_97, %c0_98] : memref<1x32xf32, #tpu.memory_space<vmem>>, vector<1x32xf32>
    %214 = vector.broadcast %213 : vector<1x32xf32> to vector<16x32xf32>
    %215 = arith.addf %212, %214 : vector<16x32xf32>
    %216 = arith.addf %145, %215 : vector<16x32xf32>
    %c0_99 = arith.constant 0 : index
    %c0_100 = arith.constant 0 : index
    %217 = vector.load %arg20[%c0_99, %c0_100] : memref<16x32xf32, #tpu.memory_space<vmem>>, vector<16x32xf32>
    tpu.vector_store %arg20[%c0_99, %c0_100], %216 {strides = array<i32>} : memref<16x32xf32, #tpu.memory_space<vmem>>, vector<16x32xf32>,
    return
  }
  func.func @transform_0(%arg0: i32) -> (i32, i32) {
    %c0_i32 = arith.constant 0 : i32
    %c0_i32_0 = arith.constant 0 : i32
    %c0_i32_1 = arith.constant 0 : i32
    return %c0_i32, %c0_i32_0 : i32, i32
  }
  func.func @transform_1(%arg0: i32) -> (i32, i32, i32) {
    %c0_i32 = arith.constant 0 : i32
    %c0_i32_0 = arith.constant 0 : i32
    %c0_i32_1 = arith.constant 0 : i32
    %c0_i32_2 = arith.constant 0 : i32
    return %c0_i32, %c0_i32_0, %c0_i32_1 : i32, i32, i32
  }
  func.func @transform_2(%arg0: i32) -> (i32, i32) {
    %c0_i32 = arith.constant 0 : i32
    %c0_i32_0 = arith.constant 0 : i32
    %c0_i32_1 = arith.constant 0 : i32
    return %c0_i32, %c0_i32_0 : i32, i32
  }
  func.func @transform_3(%arg0: i32) -> (i32, i32) {
    %c0_i32 = arith.constant 0 : i32
    %c0_i32_0 = arith.constant 0 : i32
    %c0_i32_1 = arith.constant 0 : i32
    return %c0_i32, %c0_i32_0 : i32, i32
  }
  func.func @transform_4(%arg0: i32) -> (i32, i32) {
    %c0_i32 = arith.constant 0 : i32
    %c0_i32_0 = arith.constant 0 : i32
    %c0_i32_1 = arith.constant 0 : i32
    return %c0_i32, %c0_i32_0 : i32, i32
  }
  func.func @transform_5(%arg0: i32) -> (i32, i32) {
    %c0_i32 = arith.constant 0 : i32
    %c0_i32_0 = arith.constant 0 : i32
    %c0_i32_1 = arith.constant 0 : i32
    return %c0_i32, %c0_i32_0 : i32, i32
  }
  func.func @transform_6(%arg0: i32) -> (i32, i32) {
    %c0_i32 = arith.constant 0 : i32
    %c0_i32_0 = arith.constant 0 : i32
    %c0_i32_1 = arith.constant 0 : i32
    return %c0_i32, %c0_i32_0 : i32, i32
  }
  func.func @transform_7(%arg0: i32) -> (i32, i32) {
    %c0_i32 = arith.constant 0 : i32
    %c0_i32_0 = arith.constant 0 : i32
    %c0_i32_1 = arith.constant 0 : i32
    return %c0_i32, %c0_i32_0 : i32, i32
  }
  func.func @transform_8(%arg0: i32) -> (i32, i32) {
    %c0_i32 = arith.constant 0 : i32
    %c0_i32_0 = arith.constant 0 : i32
    %c0_i32_1 = arith.constant 0 : i32
    return %c0_i32, %c0_i32_0 : i32, i32
  }
  func.func @transform_9(%arg0: i32) -> (i32, i32) {
    %c0_i32 = arith.constant 0 : i32
    %c0_i32_0 = arith.constant 0 : i32
    %c0_i32_1 = arith.constant 0 : i32
    return %c0_i32, %c0_i32_0 : i32, i32
  }
  func.func @transform_10(%arg0: i32) -> (i32, i32) {
    %c0_i32 = arith.constant 0 : i32
    %c0_i32_0 = arith.constant 0 : i32
    %c0_i32_1 = arith.constant 0 : i32
    return %c0_i32, %c0_i32_0 : i32, i32
  }
  func.func @transform_11(%arg0: i32) -> (i32, i32) {
    %c0_i32 = arith.constant 0 : i32
    %c0_i32_0 = arith.constant 0 : i32
    %c0_i32_1 = arith.constant 0 : i32
    return %c0_i32, %c0_i32_0 : i32, i32
  }
  func.func @transform_12(%arg0: i32) -> (i32, i32) {
    %c0_i32 = arith.constant 0 : i32
    %c0_i32_0 = arith.constant 0 : i32
    %c0_i32_1 = arith.constant 0 : i32
    return %c0_i32, %c0_i32_0 : i32, i32
  }
  func.func @transform_13(%arg0: i32) -> (i32, i32) {
    %c0_i32 = arith.constant 0 : i32
    %c0_i32_0 = arith.constant 0 : i32
    %c0_i32_1 = arith.constant 0 : i32
    return %c0_i32, %c0_i32_0 : i32, i32
  }
  func.func @transform_14(%arg0: i32) -> (i32, i32) {
    %c0_i32 = arith.constant 0 : i32
    %c0_i32_0 = arith.constant 0 : i32
    %c0_i32_1 = arith.constant 0 : i32
    return %c0_i32, %c0_i32_0 : i32, i32
  }
  func.func @transform_15(%arg0: i32) -> (i32, i32) {
    %c0_i32 = arith.constant 0 : i32
    %c0_i32_0 = arith.constant 0 : i32
    %c0_i32_1 = arith.constant 0 : i32
    return %c0_i32, %c0_i32_0 : i32, i32
  }
  func.func @transform_16(%arg0: i32) -> (i32, i32) {
    %c0_i32 = arith.constant 0 : i32
    %c0_i32_0 = arith.constant 0 : i32
    %c0_i32_1 = arith.constant 0 : i32
    return %c0_i32, %c0_i32_0 : i32, i32
  }
  func.func @transform_17(%arg0: i32) -> (i32, i32) {
    %c0_i32 = arith.constant 0 : i32
    %c0_i32_0 = arith.constant 0 : i32
    %c0_i32_1 = arith.constant 0 : i32
    return %c0_i32, %c0_i32_0 : i32, i32
  }
  func.func @transform_18(%arg0: i32) -> (i32, i32) {
    %c0_i32 = arith.constant 0 : i32
    %c0_i32_0 = arith.constant 0 : i32
    %c0_i32_1 = arith.constant 0 : i32
    return %c0_i32, %c0_i32_0 : i32, i32
  }
  func.func @transform_19(%arg0: i32) -> (i32, i32) {
    %c0_i32 = arith.constant 0 : i32
    %c0_i32_0 = arith.constant 0 : i32
    %c0_i32_1 = arith.constant 0 : i32
    return %c0_i32, %c0_i32_0 : i32, i32
  }
}

</mosaic_0001>

<bundles_post_ra>
// kernel: tpu_custom_call.1
= control target key start
LH: loop header
LB: loop body
LE: loop exit
PB: predicated region body
PF: predicated region fallthrough
CT: control target
= control target key end

     0   :  { %s2543_s0 = inlined_call_operand.hbm [shape: f32[16,32], index: 0, kind: input, shape index: {}]   ;;  %s2544_s1 = inlined_call_operand.vmem [shape: bf16[4,16,16], index: 1, kind: input, shape index: {}]   ;;  %s2545_s2 = inlined_call_operand.hbm [shape: f32[16,16], index: 2, kind: input, shape index: {}]   ;;  %s2546_s3 = inlined_call_operand.vmem [shape: f32[1,32], index: 3, kind: input, shape index: {}]   ;;  %s2547_s4 = inlined_call_operand.vmem [shape: f32[1,32], index: 4, kind: input, shape index: {}]   ;;  %s2548_s5 = inlined_call_operand.hbm [shape: bf16[32,96], index: 5, kind: input, shape index: {}]   ;;  %s2549_s6 = inlined_call_operand.vmem [shape: f32[1,96], index: 6, kind: input, shape index: {}]   ;;  %s2550_s7 = inlined_call_operand.hbm [shape: bf16[32,32], index: 7, kind: input, shape index: {}]   ;;  %s2551_s8 = inlined_call_operand.vmem [shape: f32[1,32], index: 8, kind: input, shape index: {}]   ;;  %s2552_s9 = inlined_call_operand.vmem [shape: f32[1,32], index: 9, kind: input, shape index: {}]   ;;  %s2553_s10 = inlined_call_operand.vmem [shape: f32[1,32], index: 10, kind: input, shape index: {}]   ;;  %s2554_s11 = inlined_call_operand.hbm [shape: bf16[32,128], index: 11, kind: input, shape index: {}]   ;;  %s2555_s12 = inlined_call_operand.vmem [shape: f32[1,128], index: 12, kind: input, shape index: {}]   ;;  %s2556_s13 = inlined_call_operand.vmem [shape: bf16[128,128], index: 13, kind: input, shape index: {}]   ;;  %s2557_s14 = inlined_call_operand.vmem [shape: f32[1,128], index: 14, kind: input, shape index: {}]   ;;  %s2558_s15 = inlined_call_operand.hbm [shape: bf16[128,128], index: 15, kind: input, shape index: {}]   ;;  %s2559_s16 = inlined_call_operand.vmem [shape: f32[1,128], index: 16, kind: input, shape index: {}]   ;;  %s2560_s17 = inlined_call_operand.vmem [shape: bf16[128,32], index: 17, kind: input, shape index: {}]   ;;  %s2561_s18 = inlined_call_operand.vmem [shape: f32[1,32], index: 18, kind: input, shape index: {}]   ;;  %s2562_s19 = inlined_call_operand.hbm [shape: f32[16,32], index: 19, kind: output, shape index: {}]  }
   0x1   :  { %2564 = sst [smem:[#allocation20_spill]] %s2543_s0 }
   0x2   :  { %2565 = sst [smem:[#allocation21_spill]] %s2544_s1 }
   0x3   :  { %2566 = sst [smem:[#allocation22_spill]] %s2545_s2 }
   0x4   :  { %2567 = sst [smem:[#allocation23_spill]] %s2546_s3 }
   0x5   :  { %24 = vsyncpa [#allocation4], 0 }
   0x6   :  { %25 = vsyncpa [#allocation7], 0 }
   0x7   :  { %26 = vsyncpa [#allocation10], 0 }
   0x8   :  { %27 = vsyncpa [#allocation13], 0 }
   0x9   :  { %28 = vsyncpa [#allocation5], 0  ;;  %s2108_s0 = smov [#allocation6]  }
   0xa   :  { %s48_s30 = sshll.u32 %s2108_s0, 4  ;;  %s49_s30 = int_to_ptr.vmem [resolvable:$true] %s48_s30 }
   0xb   :  { %s1966_s20 = scalar_lea.vmem %s49_s30, 256  ;;  %p1971_p1 = scmp.lt.s32.totalorder %s49_s30, %s49_s30 }
   0xc   :  { %p1967_p0 = scmp.ne.s32.totalorder %s49_s30, %s1966_s20  ;;  %p1972_p2 = scmp.lt.s32.totalorder %s1966_s20, %s1966_s20 }
   0xe   :  { %p1973_p3 = por %p1972_p2, %p1971_p1 }
  0x10   :  { %p1974_p4 = pnand %p1973_p3, %p1967_p0 }
  0x12   :  { %1977 = shalt.err (!%p1974_p4)
}
  0x13   :  { %s2109_s21 = smov 128   ;;  %s2110_s1 = smov 8  }
  0x14   :  { %s2568_s23 = sld [smem:[#allocation22_spill]]  ;;  %s2111_s24 = smov [#allocation9]  }
  0x15   :  { %s78_s25 = sshll.u32 %s2111_s24, 4  ;;  %s2112_s3 = smov [#allocation3]   ;;  %s79_s25 = int_to_ptr.vmem [resolvable:$true] %s78_s25 }
  0x16   :  { %s34_s26 = sshll.u32 %s2112_s3, 4  ;;  %s1986_s27 = scalar_lea.vmem %s79_s25, 256  ;;  %s35_s26 = int_to_ptr.vmem [resolvable:$true] %s34_s26 }
  0x17   :  { %p1987_p5 = scmp.ne.s32.totalorder %s79_s25, %s1986_s27  ;;  %p1991_p6 = scmp.lt.s32.totalorder %s79_s25, %s79_s25 }
  0x18   :  { %p1992_p7 = scmp.lt.s32.totalorder %s1986_s27, %s1986_s27 }
  0x1a   :  { %54 = dma.hbm_to_vmem [thread:$0]  %s2568_s23, 256, %s49_s30, [#allocation7], %s2109_s21, %s2109_s21, %s2110_s1  }
  0x1b   :  { %p1993_p8 = por %p1992_p7, %p1991_p6 }
  0x1d   :  { %p1994_p9 = pnand %p1993_p8, %p1987_p5 }
  0x1f   :  { %1997 = shalt.err (!%p1994_p9)
}
  0x20   :  { %s2113_s28 = smov 64   ;;  %s2114_s29 = smov 4  }
  0x21   :  { %84 = dma.hbm_to_vmem [thread:$0]  %s2550_s7, 256, %s79_s25, [#allocation10], %s2113_s28, %s2113_s28, %s2114_s29  }
  0x22   :  { %s2006_s30 = scalar_lea.vmem %s35_s26, 256  ;;  %p2011_p11 = scmp.lt.s32.totalorder %s35_s26, %s35_s26 }
  0x23   :  { %p2007_p10 = scmp.ne.s32.totalorder %s35_s26, %s2006_s30  ;;  %p2012_p12 = scmp.lt.s32.totalorder %s2006_s30, %s2006_s30 }
  0x25   :  { %p2013_p13 = por %p2012_p12, %p2011_p11 }
  0x27   :  { %p2014_p0 = pnand %p2013_p13, %p2007_p10 }
  0x29   :  { %2017 = shalt.err (!%p2014_p0)
}
  0x2a   :  { %s2569_s23 = sld [smem:[#allocation20_spill]]  ;;  %s2115_s24 = smov [#allocation8]  }
  0x2b   :  { %s64_s3 = sshll.u32 %s2115_s24, 4  ;;  %s2116_s27 = smov [#allocation11]   ;;  %s65_s3 = int_to_ptr.vmem [resolvable:$true] %s64_s3 }
  0x2c   :  { %s96_s7 = sshll.u32 %s2116_s27, 4  ;;  %s2026_s25 = scalar_lea.vmem %s65_s3, 256  ;;  %s97_s7 = int_to_ptr.vmem [resolvable:$true] %s96_s7 }
  0x2d   :  { %p2027_p1 = scmp.ne.s32.totalorder %s65_s3, %s2026_s25  ;;  %p2031_p2 = scmp.lt.s32.totalorder %s65_s3, %s65_s3 }
  0x2e   :  { %p2032_p3 = scmp.lt.s32.totalorder %s2026_s25, %s2026_s25 }
  0x30   :  { %40 = dma.hbm_to_vmem [thread:$0]  %s2569_s23, 256, %s35_s26, [#allocation4], %s2109_s21, %s2109_s21, %s2110_s1  }
  0x31   :  { %p2033_p4 = por %p2032_p3, %p2031_p2 }
  0x33   :  { %p2034_p5 = pnand %p2033_p4, %p2027_p1 }
  0x35   :  { %2037 = shalt.err (!%p2034_p5)
}
  0x36   :  { %70 = dma.hbm_to_vmem [thread:$0]  %s2548_s5, 256, %s65_s3, [#allocation7], %s2113_s28, %s2113_s28, %s2114_s29  }
  0x37   :  { %s2046_s26 = scalar_lea.vmem %s97_s7, 256  ;;  %p2051_p7 = scmp.lt.s32.totalorder %s97_s7, %s97_s7 }
  0x38   :  { %p2047_p6 = scmp.ne.s32.totalorder %s97_s7, %s2046_s26  ;;  %p2052_p8 = scmp.lt.s32.totalorder %s2046_s26, %s2046_s26 }
  0x3a   :  { %p2053_p9 = por %p2052_p8, %p2051_p7 }
  0x3c   :  { %p2054_p10 = pnand %p2053_p9, %p2047_p6 }
  0x3e   :  { %2057 = shalt.err (!%p2054_p10)
}
  0x3f   :  { %102 = dma.hbm_to_vmem [thread:$0]  %s2554_s11, 256, %s97_s7, [#allocation10], %s2113_s28, %s2113_s28, %s2114_s29  }
  0x40   :  { %s2117_s2 = smov [#allocation12]  }
  0x41   :  { %s114_s23 = sshll.u32 %s2117_s2, 4  ;;  %s115_s23 = int_to_ptr.vmem [resolvable:$true] %s114_s23 }
  0x42   :  { %s2066_s24 = scalar_lea.vmem %s115_s23, 1024  ;;  %p2071_p12 = scmp.lt.s32.totalorder %s115_s23, %s115_s23 }
  0x43   :  { %p2067_p11 = scmp.ne.s32.totalorder %s115_s23, %s2066_s24  ;;  %p2072_p13 = scmp.lt.s32.totalorder %s2066_s24, %s2066_s24 }
  0x45   :  { %p2073_p0 = por %p2072_p13, %p2071_p12 }
  0x47   :  { %p2074_p1 = pnand %p2073_p0, %p2067_p11 }
  0x49   :  { %2077 = shalt.err (!%p2074_p1)
}
  0x4a   :  { %120 = dma.hbm_to_vmem [thread:$0]  %s2558_s15, 1024, %s115_s23, [#allocation13], %s2113_s28, %s2113_s28, %s2114_s29  }
  0x4b   :  { %2098 = dma.done.wait [#allocation4], 256  }
  0x4c   :  { %2099 = vsyncadd [#allocation4], 4294967040 }
  0x4d   :  { %2100 = dma.done.wait [#allocation7], 512  }
  0x4e   :  { %2101 = vsyncadd [#allocation7], 4294966784 }
  0x4f   :  { %2102 = dma.done.wait [#allocation10], 512  }
  0x50   :  { %2103 = vsyncadd [#allocation10], 4294966784 }
  0x51   :  { %2104 = dma.done.wait [#allocation13], 1024  }
  0x52   :  { %2105 = vsyncadd [#allocation13], 4294966272  ;;  %vm148_vm0 = vcmask 261120   ;;  %v2269_v0 = vld [vmem:[#allocation3] sm:$0xff]  ;;  %v2271_v1 = vld [vmem:[#allocation3 + $0x8] sm:$0xff]  ;;  %v2118_v15 = vmov 0.0  }
  0x53   :  { %v149_v2 = vsel %vm148_vm0, %v2269_v0, 0.0  ;;  %v152_v3 = vsel %vm148_vm0, %v2271_v1, 0.0  ;;  %v1876_v14 = vld [vmem:[#allocation8 + $0x8] sm:$0xff]   ;;  %1715 = vmatprep.subr.bf16.mxu0 %v2118_v15  ;;  %vm2119_vm1 = vmmov 0   ;;  %v1877_v16 = vld [vmem:[#allocation8] sm:$0xff]   ;;  %s2570_s29 = sld [smem:[#allocation23_spill]] }
  0x54   :  { %150 = vadd.xlane.f32.xlu0 %v149_v2  ;;  %1719 = vmatprep.mubr.msk.bf16.mxu0 %vm2119_vm1, %v2118_v15  ;;  %v1568_v29 = vld [vmem:[%s2547_s4] ss:$0 sm:$0xff]  ;;  %s2120_s20 = smov 96   ;;  %vm275_vm2 = vcmask 64512   ;;  %s2571_s26 = sld [smem:[#allocation21_spill]]  ;;  %vm359_vm3 = vcmask 130048  }
  0x55   :  { %1716 = vmatpush3.bf16.msra.mxu0 %v1876_v14  ;;  %v1569_v34 = vld [vmem:[%s2549_s6] ss:$0 sm:$0xff]  ;;  %v2319_v58 = vld [vmem:[#allocation6 + $0x8] sm:$0xff]  ;;  %s2121_s30 = smov 120   ;;  %s2122_s22 = smov 88   ;;  %vm619_vm12 = vcmask 130112  }
  0x56   :  { %1717 = vmatprep.subr.bf16.mxu0 %v2118_v15  ;;  %v2321_v60 = vld [vmem:[#allocation6] sm:$0xff]  ;;  %s2123_s23 = smov 56   ;;  %s2124_s24 = smov 104   ;;  %vm802_vm13 = vcmask 195712   ;;  %vm985_vm14 = vcmask 261312  }
  0x57   :  { %s2125_s5 = smov 112   ;;  %s2126_s3 = smov 80  }
  0x58   :  { %153 = vadd.xlane.f32.xlu0 %v152_v3  ;;  %s2127_s11 = smov 72   ;;  %s2128_s25 = smov 40  }
  0x59   :  { %1718 = vmatpush3.bf16.msra.mxu0 %v1877_v16  ;;  %v1567_v25 = vld [vmem:[%s2570_s29] ss:$0 sm:$0xff]  ;;  %s2129_s0 = smov 48   ;;  %s2131_s4 = smov 24  }
  0x5a   :  { %v1637_v43 = vld [vmem:[%s2571_s26] sm:$0xff]  }
  0x5b   :  { %v1639_v44 = vunpack.c.h.bf16 %v1637_v43  ;;  %v1638_v45 = vunpack.c.l.bf16 %v1637_v43 }
  0xdd   :  { %v151_v4 = vpop.xlane.xlu0 %150 }
  0xde   :  { %v156_v5 = vmul.f32 0.03125, %v151_v4 }
  0xe0   :  { %v158_v6 = vsub.f32 %v2269_v0, %v156_v5 }
  0xe1   :  { %v154_v7 = vpop.xlane.xlu0 %153 }
  0xe2   :  { %v157_v8 = vmul.f32 0.03125, %v154_v7  ;;  %v160_v9 = vmul.f32 %v158_v6, %v158_v6 }
  0xe4   :  { %v159_v10 = vsub.f32 %v2271_v1, %v157_v8  ;;  %v162_v11 = vsel %vm148_vm0, %v160_v9, 0.0 }
  0xe5   :  { %163 = vadd.xlane.f32.xlu1 %v162_v11 }
  0xe6   :  { %v161_v12 = vmul.f32 %v159_v10, %v159_v10 }
  0xe8   :  { %v165_v13 = vsel %vm148_vm0, %v161_v12, 0.0 }
  0xe9   :  { %166 = vadd.xlane.f32.xlu1 %v165_v13 }
 0x16e   :  { %v164_v17 = vpop.xlane.xlu1 %163 }
 0x16f   :  { %v168_v18 = vmul.f32 0.03125, %v164_v17 }
 0x171   :  { %v170_v19 = vadd.f32 1e-05, %v168_v18 }
 0x172   :  { %v167_v20 = vpop.xlane.xlu1 %166 }
 0x173   :  { %1906 = vrsqrt.f32 %v170_v19  ;;  %v169_v21 = vmul.f32 0.03125, %v167_v20 }
 0x175   :  { %v171_v22 = vadd.f32 1e-05, %v169_v21 }
 0x177   :  { %1908 = vrsqrt.f32 %v171_v22  ;;  %v1652_v22 = vld [vmem:[%s2571_s26 + $0x8] sm:$0xff]  }
 0x180   :  { %v1907_v23 = vpop.eup %1906 }
 0x181   :  { %v174_v24 = vmul.f32 %v1907_v23, %v158_v6 }
 0x183   :  { %v183_v28 = vmul.f32 %v1567_v25, %v174_v24  ;;  %v1643_v24 = vunpack.c.h.bf16 %v1652_v22 }
 0x184   :  { %v1909_v26 = vpop.eup %1908 }
 0x185   :  { %v175_v27 = vmul.f32 %v1909_v26, %v159_v10  ;;  %v192_v31 = vadd.f32 %v1568_v29, %v183_v28  ;;  %v1642_v26 = vunpack.c.l.bf16 %v1652_v22 }
 0x187   :  { %v184_v30 = vmul.f32 %v1567_v25, %v175_v27 }
 0x189   :  { %v193_v32 = vadd.f32 %v1568_v29, %v184_v30 }
 0x18b   :  { %v194_v33 = vpack.c.bf16 %v193_v32, %v192_v31 }
 0x18d   :  { %1720 = vmatmul.mubr.msk.bf16.vlgmr.msra.gmra.mxu0 %vm148_vm0, %v194_v33 }
 0x24d   :  { %v255_v35 = vpop.f32.mrf.mxu0 }
 0x24e   :  { %v2295_v36 = vadd.f32 %v1569_v34, %v255_v35 }
 0x24f   :  { %v1721_v37 = vpop.f32.mrf.mxu0 }
 0x250   :  { %271 = vrot.lane.b32.xlu0 %v2295_v36, %s2120_s20 }
 0x251   :  { %v258_v38 = vpop.f32.mrf.mxu0 }
 0x252   :  { %v2298_v39 = vadd.f32 %v1569_v34, %v258_v38 }
 0x253   :  { %v1722_v40 = vpop.f32.mrf.mxu0 }
 0x254   :  { %273 = vrot.lane.b32.xlu1 %v2298_v39, %s2120_s20  ;;  %1723 = vmatprep.subr.msk.mxu0 %vm275_vm2, %v2298_v39  ;;  %v2331_v4 = vpack.c.bf16 %v2298_v39, %v2295_v36  ;;  %s2130_s20 = smov 16  }
 0x255   :  { %1724 = vmatpush3.xpose.msk.msra.mxu0 %vm275_vm2, %v2298_v39 }
 0x256   :  { %1725 = vmatprep.subr.msk.mxu0 %vm275_vm2, %v2295_v36 }
 0x259   :  { %1726 = vmatpush3.xpose.msk.msra.mxu0 %vm275_vm2, %v2295_v36 }
 0x25a   :  { %1730 = vmatprep.subr.bf16.mxu0 %v2118_v15 }
 0x2c2   :  { %v272_v41 = vpop.permute.xlu0 %271 }
 0x2c3   :  { %1727 = vmatprep.mubr.msk.f32.mxu0 %vm275_vm2, %v272_v41 }
 0x2c6   :  { %v274_v42 = vpop.permute.xlu1 %273 }
 0x2c7   :  { %1728 = vmatmul.mubr.msk.f32.vlgmr.msra.gmra.mxu0 %vm275_vm2, %v274_v42 }
 0x2c8   :  { %1732 = vmatprep.mubr.msk.bf16.mxu0 %vm2119_vm1, %v2118_v15 }
 0x387   :  { %v1729_v46 = vpop.f32.mrf.mxu0 }
 0x388   :  { %v356_v47 = vadd.f32 %v1729_v46, %v1639_v44 }
 0x389   :  { %v350_v48 = vpop.f32.mrf.mxu0 }
 0x38a   :  { %v351_v49 = vadd.f32 %v1638_v45, %v350_v48  ;;  %v363_v50 = vsel %vm359_vm3, %v356_v47, -inf }
 0x38b   :  { %364 = vmax.xlane.f32.xlu0 %v363_v50 }
 0x38c   :  { %v360_v51 = vsel %vm359_vm3, %v351_v49, -inf }
 0x38d   :  { %361 = vmax.xlane.f32.xlu1 %v360_v51 }
 0x414   :  { %v365_v52 = vpop.xlane.xlu0 %364 }
 0x415   :  { %v367_v53 = vsub.f32 %v356_v47, %v365_v52 }
 0x416   :  { %v362_v54 = vpop.xlane.xlu1 %361 }
 0x417   :  { %v370_v55 = vmul.f32 1.442695, %v367_v53  ;;  %v366_v56 = vsub.f32 %v351_v49, %v362_v54 }
 0x419   :  { %1910 = vpow2.f32 %v370_v55  ;;  %v368_v57 = vmul.f32 1.442695, %v366_v56 }
 0x41b   :  { %1912 = vpow2.f32 %v368_v57 }
 0x426   :  { %v1911_v59 = vpop.eup %1910 }
 0x427   :  { %v373_v61 = vmul.f32 %v1911_v59, %v2319_v58 }
 0x428   :  { %v1913_v62 = vpop.eup %1912 }
 0x429   :  { %v377_v63 = vsel %vm359_vm3, %v373_v61, 0.0  ;;  %v372_v2 = vmul.f32 %v1913_v62, %v2321_v60 }
 0x42a   :  { %378 = vadd.xlane.f32.xlu1 %v377_v63 }
 0x42b   :  { %v374_v3 = vsel %vm359_vm3, %v372_v2, 0.0 }
 0x42c   :  { %375 = vadd.xlane.f32.xlu0 %v374_v3  ;;  %v1653_v3 = vld [vmem:[%s2571_s26 + $0x10] sm:$0xff]  }
 0x43b   :  { %450 = vrot.lane.b32.xlu1 %v2298_v39, %s2121_s30 }
 0x43f   :  { %448 = vrot.lane.b32.xlu1 %v2295_v36, %s2121_s30 }
 0x442   :  { %390 = vrot.lane.b32.xlu0 %v2331_v4, %s2113_s28 }
 0x443   :  { %444 = vrot.lane.b32.xlu1 %v2295_v36, %s2122_s22 }
 0x446   :  { %446 = vrot.lane.b32.xlu0 %v2298_v39, %s2122_s22 }
 0x4b3   :  { %v379_v5 = vpop.xlane.xlu1 %378 }
 0x4b4   :  { %vm381_vm4 = vcmp.gt.f32.partialorder %v379_v5, 0.0 }
 0x4b5   :  { %v383_v6 = vsel %vm381_vm4, %v379_v5, 1.0  ;;  %v376_v7 = vpop.xlane.xlu0 %375  ;;  %v1647_v5 = vunpack.c.h.bf16 %v1653_v3 }
 0x4b6   :  { %1914 = vrcp.f32 %v383_v6  ;;  %vm380_vm5 = vcmp.gt.f32.partialorder %v376_v7, 0.0  ;;  %v1646_v6 = vunpack.c.l.bf16 %v1653_v3 }
 0x4b7   :  { %v382_v8 = vsel %vm380_vm5, %v376_v7, 1.0  ;;  %v451_v10 = vpop.permute.xlu1 %450 }
 0x4b8   :  { %1916 = vrcp.f32 %v382_v8 }
 0x4b9   :  { %v391_v9 = vpop.permute.xlu0 %390 }
 0x4ba   :  { %1731 = vmatpush3.bf16.msra.mxu0 %v391_v9 }
 0x4bb   :  { %1736 = vmatprep.subr.msk.mxu0 %vm275_vm2, %v451_v10  ;;  %v449_v12 = vpop.permute.xlu1 %448 }
 0x4bd   :  { %v447_v19 = vpop.permute.xlu0 %446 }
 0x4bf   :  { %v445_v18 = vpop.permute.xlu1 %444 }
 0x4c3   :  { %v1915_v11 = vpop.eup %1914 }
 0x4c4   :  { %v387_v16 = vmul.f32 %v1915_v11, %v373_v61 }
 0x4c5   :  { %v1917_v13 = vpop.eup %1916 }
 0x4c6   :  { %v386_v14 = vmul.f32 %v1917_v13, %v372_v2 }
 0x4c8   :  { %v388_v17 = vpack.c.bf16 %v387_v16, %v386_v14 }
 0x4ca   :  { %1733 = vmatmul.mubr.msk.bf16.vlgmr.msra.gmra.mxu0 %vm359_vm3, %v388_v17 }
 0x4cb   :  { %1737 = vmatpush3.xpose.msk.msra.mxu0 %vm275_vm2, %v451_v10  ;;  %1740 = vmatprep.mubr.msk.f32.mxu0 %vm275_vm2, %v445_v18  ;;  %v1654_v18 = vld [vmem:[%s2571_s26 + $0x18] sm:$0xff]  }
 0x4cc   :  { %1738 = vmatprep.subr.msk.mxu0 %vm275_vm2, %v449_v12 }
 0x4cf   :  { %1739 = vmatpush3.xpose.msk.msra.mxu0 %vm275_vm2, %v449_v12 }
 0x4d0   :  { %1743 = vmatprep.subr.bf16.mxu0 %v2118_v15 }
 0x4d2   :  { %1741 = vmatmul.mubr.msk.f32.vlgmr.msra.gmra.mxu0 %vm275_vm2, %v447_v19  ;;  %v1650_v19 = vunpack.c.l.bf16 %v1654_v18 }
 0x4d3   :  { %1745 = vmatprep.mubr.msk.bf16.mxu0 %vm2119_vm1, %v2118_v15 }
 0x58a   :  { %v430_v20 = vpop.f32.mrf.mxu0 }
 0x58b   :  { %437 = vst.msk [vmem:[#allocation2] sm:$0xff] %vm275_vm2, %v430_v20 }
 0x58c   :  { %v1734_v21 = vpop.f32.mrf.mxu0 }
 0x58d   :  { %v1651_v21 = vunpack.c.h.bf16 %v1654_v18 }
 0x58e   :  { %v433_v23 = vpop.f32.mrf.mxu0 }
 0x58f   :  { %438 = vst.msk [vmem:[#allocation2 + $0x8] sm:$0xff] %vm275_vm2, %v433_v23 }
 0x590   :  { %v1735_v25 = vpop.f32.mrf.mxu0 }
 0x592   :  { %v1742_v27 = vpop.f32.mrf.mxu0 }
 0x593   :  { %v532_v28 = vadd.f32 %v1742_v27, %v1643_v24 }
 0x594   :  { %v526_v29 = vpop.f32.mrf.mxu0 }
 0x595   :  { %v527_v30 = vadd.f32 %v1642_v26, %v526_v29  ;;  %v538_v31 = vsel %vm359_vm3, %v532_v28, -inf }
 0x596   :  { %539 = vmax.xlane.f32.xlu0 %v538_v31 }
 0x597   :  { %v535_v32 = vsel %vm359_vm3, %v527_v30, -inf }
 0x598   :  { %536 = vmax.xlane.f32.xlu1 %v535_v32 }
 0x5a9   :  { %564 = vrot.lane.b32.xlu1 %v2331_v4, %s2123_s23 }
 0x5ad   :  { %816 = vrot.lane.b32.xlu1 %v2298_v39, %s2124_s24 }
 0x5b1   :  { %631 = vrot.lane.b32.xlu1 %v2295_v36, %s2125_s5 }
 0x5b5   :  { %814 = vrot.lane.b32.xlu1 %v2295_v36, %s2124_s24 }
 0x5b9   :  { %629 = vrot.lane.b32.xlu1 %v2298_v39, %s2126_s3 }
 0x5bd   :  { %812 = vrot.lane.b32.xlu1 %v2298_v39, %s2127_s11 }
 0x61f   :  { %v540_v33 = vpop.xlane.xlu0 %539 }
 0x620   :  { %v542_v34 = vsub.f32 %v532_v28, %v540_v33 }
 0x621   :  { %v537_v35 = vpop.xlane.xlu1 %536 }
 0x622   :  { %v545_v37 = vmul.f32 1.442695, %v542_v34  ;;  %v541_v38 = vsub.f32 %v527_v30, %v537_v35 }
 0x624   :  { %1918 = vpow2.f32 %v545_v37  ;;  %v543_v40 = vmul.f32 1.442695, %v541_v38 }
 0x625   :  { %v565_v41 = vpop.permute.xlu1 %564 }
 0x626   :  { %1920 = vpow2.f32 %v543_v40  ;;  %1744 = vmatpush3.bf16.msra.mxu0 %v565_v41 }
 0x629   :  { %v817_v42 = vpop.permute.xlu1 %816 }
 0x62a   :  { %1762 = vmatprep.subr.msk.mxu0 %vm275_vm2, %v817_v42 }
 0x62d   :  { %v632_v51 = vpop.permute.xlu1 %631 }
 0x631   :  { %v1919_v43 = vpop.eup %1918  ;;  %v815_v55 = vpop.permute.xlu1 %814 }
 0x632   :  { %v548_v44 = vmul.f32 %v1919_v43, %v2319_v58 }
 0x633   :  { %v1921_v45 = vpop.eup %1920 }
 0x634   :  { %v552_v46 = vsel %vm359_vm3, %v548_v44, 0.0  ;;  %v547_v47 = vmul.f32 %v1921_v45, %v2321_v60 }
 0x635   :  { %553 = vadd.xlane.f32.xlu0 %v552_v46 }
 0x636   :  { %v549_v48 = vsel %vm359_vm3, %v547_v47, 0.0 }
 0x639   :  { %550 = vadd.xlane.f32.xlu0 %v549_v48 }
 0x64f   :  { %633 = vrot.lane.b32.xlu0 %v2298_v39, %s2125_s5 }
 0x653   :  { %627 = vrot.lane.b32.xlu0 %v2295_v36, %s2126_s3 }
 0x657   :  { %810 = vrot.lane.b32.xlu0 %v2295_v36, %s2127_s11  ;;  %v630_v36 = vpop.permute.xlu1 %629 }
 0x65b   :  { %v813_v2 = vpop.permute.xlu1 %812 }
 0x6be   :  { %v554_v49 = vpop.xlane.xlu0 %553 }
 0x6bf   :  { %vm556_vm6 = vcmp.gt.f32.partialorder %v554_v49, 0.0 }
 0x6c0   :  { %v558_v50 = vsel %vm556_vm6, %v554_v49, 1.0 }
 0x6c1   :  { %1922 = vrcp.f32 %v558_v50 }
 0x6c2   :  { %v551_v52 = vpop.xlane.xlu0 %550 }
 0x6c3   :  { %vm555_vm7 = vcmp.gt.f32.partialorder %v551_v52, 0.0 }
 0x6c4   :  { %v557_v53 = vsel %vm555_vm7, %v551_v52, 1.0 }
 0x6c5   :  { %1924 = vrcp.f32 %v557_v53 }
 0x6c6   :  { %v634_v54 = vpop.permute.xlu0 %633 }
 0x6c7   :  { %1749 = vmatprep.subr.msk.mxu1 %vm275_vm2, %v634_v54 }
 0x6c8   :  { %1750 = vmatpush3.xpose.msk.msra.mxu1 %vm275_vm2, %v634_v54 }
 0x6c9   :  { %1751 = vmatprep.subr.msk.mxu1 %vm275_vm2, %v632_v51 }
 0x6ca   :  { %v628_v39 = vpop.permute.xlu0 %627 }
 0x6cb   :  { %1753 = vmatprep.mubr.msk.f32.mxu1 %vm275_vm2, %v628_v39 }
 0x6cc   :  { %1752 = vmatpush3.xpose.msk.msra.mxu1 %vm275_vm2, %v632_v51 }
 0x6cd   :  { %1756 = vmatprep.subr.bf16.mxu1 %v2118_v15 }
 0x6ce   :  { %v1923_v56 = vpop.eup %1922  ;;  %v811_v63 = vpop.permute.xlu0 %810 }
 0x6cf   :  { %1754 = vmatmul.mubr.msk.f32.vlgmr.msra.gmra.mxu1 %vm275_vm2, %v630_v36  ;;  %v562_v61 = vmul.f32 %v1923_v56, %v548_v44 }
 0x6d0   :  { %1758 = vmatprep.mubr.msk.bf16.mxu1 %vm2119_vm1, %v2118_v15 }
 0x6d2   :  { %v1925_v57 = vpop.eup %1924 }
 0x6d3   :  { %v561_v59 = vmul.f32 %v1925_v57, %v547_v47 }
 0x6d5   :  { %v563_v62 = vpack.c.bf16 %v562_v61, %v561_v59 }
 0x6d7   :  { %1746 = vmatmul.mubr.msk.bf16.vlgmr.msra.gmra.mxu0 %vm359_vm3, %v563_v62 }
 0x6d8   :  { %1763 = vmatpush3.xpose.msk.msra.mxu0 %vm275_vm2, %v817_v42  ;;  %1766 = vmatprep.mubr.msk.f32.mxu0 %vm275_vm2, %v811_v63 }
 0x6d9   :  { %1764 = vmatprep.subr.msk.mxu0 %vm275_vm2, %v815_v55 }
 0x6dc   :  { %1765 = vmatpush3.xpose.msk.msra.mxu0 %vm275_vm2, %v815_v55 }
 0x6dd   :  { %1769 = vmatprep.subr.bf16.mxu0 %v2118_v15 }
 0x6df   :  { %1767 = vmatmul.mubr.msk.f32.vlgmr.msra.gmra.mxu0 %vm275_vm2, %v813_v2 }
 0x6e0   :  { %1771 = vmatprep.mubr.msk.bf16.mxu0 %vm2119_vm1, %v2118_v15 }
 0x78f   :  { %v1755_v7 = vpop.f32.mrf.mxu1 }
 0x790   :  { %v715_v8 = vadd.f32 %v1755_v7, %v1647_v5 }
 0x791   :  { %v709_v9 = vpop.f32.mrf.mxu1 }
 0x792   :  { %v710_v10 = vadd.f32 %v1646_v6, %v709_v9  ;;  %v721_v11 = vsel %vm359_vm3, %v715_v8, -inf }
 0x793   :  { %722 = vmax.xlane.f32.xlu1 %v721_v11 }
 0x794   :  { %v718_v12 = vsel %vm359_vm3, %v710_v10, -inf }
 0x795   :  { %719 = vmax.xlane.f32.xlu0 %v718_v12 }
 0x797   :  { %v604_v13 = vpop.f32.mrf.mxu0 }
 0x799   :  { %v1747_v14 = vpop.f32.mrf.mxu0 }
 0x79b   :  { %v607_v16 = vpop.f32.mrf.mxu0 }
 0x79d   :  { %v1748_v17 = vpop.f32.mrf.mxu0 }
 0x79e   :  { %v1879_v17 = vld [vmem:[#allocation9] sm:$0xff]  }
 0x79f   :  { %v1768_v20 = vpop.f32.mrf.mxu0 }
 0x7a0   :  { %v898_v24 = vadd.f32 %v1768_v20, %v1651_v21 }
 0x7a1   :  { %v892_v22 = vpop.f32.mrf.mxu0 }
 0x7a2   :  { %v893_v23 = vadd.f32 %v1650_v19, %v892_v22  ;;  %v904_v26 = vsel %vm359_vm3, %v898_v24, -inf }
 0x7a4   :  { %v901_v25 = vsel %vm359_vm3, %v893_v23, -inf }
 0x7a5   :  { %902 = vmax.xlane.f32.xlu0 %v901_v25 }
 0x7a9   :  { %905 = vmax.xlane.f32.xlu0 %v904_v26 }
 0x81c   :  { %v723_v27 = vpop.xlane.xlu1 %722 }
 0x81d   :  { %v725_v28 = vsub.f32 %v715_v8, %v723_v27 }
 0x81e   :  { %v720_v29 = vpop.xlane.xlu0 %719 }
 0x81f   :  { %v728_v30 = vmul.f32 1.442695, %v725_v28  ;;  %v724_v31 = vsub.f32 %v710_v10, %v720_v29 }
 0x821   :  { %1926 = vpow2.f32 %v728_v30  ;;  %v726_v32 = vmul.f32 1.442695, %v724_v31  ;;  %v1602_v30 = vld [vmem:[%s2551_s8] ss:$0 sm:$0xff] }
 0x823   :  { %1928 = vpow2.f32 %v726_v32 }
 0x82e   :  { %v1927_v33 = vpop.eup %1926  ;;  %v903_v34 = vpop.xlane.xlu0 %902 }
 0x82f   :  { %v907_v35 = vsub.f32 %v893_v23, %v903_v34  ;;  %v731_v37 = vmul.f32 %v1927_v33, %v2319_v58 }
 0x830   :  { %v1929_v38 = vpop.eup %1928 }
 0x831   :  { %v909_v40 = vmul.f32 1.442695, %v907_v35  ;;  %v735_v41 = vsel %vm359_vm3, %v731_v37, 0.0  ;;  %v730_v42 = vmul.f32 %v1929_v38, %v2321_v60 }
 0x832   :  { %v906_v43 = vpop.xlane.xlu0 %905  ;;  %736 = vadd.xlane.f32.xlu1 %v735_v41 }
 0x833   :  { %1930 = vpow2.f32 %v909_v40  ;;  %v908_v44 = vsub.f32 %v898_v24, %v906_v43  ;;  %v732_v45 = vsel %vm359_vm3, %v730_v42, 0.0 }
 0x834   :  { %733 = vadd.xlane.f32.xlu0 %v732_v45 }
 0x835   :  { %v911_v46 = vmul.f32 1.442695, %v908_v44 }
 0x837   :  { %1932 = vpow2.f32 %v911_v46 }
 0x840   :  { %v1931_v47 = vpop.eup %1930 }
 0x841   :  { %v913_v48 = vmul.f32 %v1931_v47, %v2321_v60 }
 0x843   :  { %v915_v49 = vsel %vm359_vm3, %v913_v48, 0.0 }
 0x844   :  { %v1933_v50 = vpop.eup %1932  ;;  %916 = vadd.xlane.f32.xlu0 %v915_v49 }
 0x845   :  { %v914_v51 = vmul.f32 %v1933_v50, %v2319_v58  ;;  %v1880_v50 = vld [vmem:[#allocation11 + $0x8] sm:$0xff]  }
 0x847   :  { %v918_v52 = vsel %vm359_vm3, %v914_v51, 0.0 }
 0x848   :  { %919 = vadd.xlane.f32.xlu1 %v918_v52  ;;  %v1882_v52 = vld [vmem:[%s2556_s13 + $0x38] sm:$0xff]  }
 0x859   :  { %930 = vrot.lane.b32.xlu1 %v2331_v4, %s2128_s25 }
 0x85a   :  { %747 = vrot.lane.b32.xlu0 %v2331_v4, %s2129_s0  ;;  %s2132_s0 = smov [#allocation14]  }
 0x85d   :  { %613 = vrot.lane.b32.xlu1 %v604_v13, %s2110_s1 }
 0x861   :  { %615 = vrot.lane.b32.xlu1 %v607_v16, %s2110_s1  ;;  %v1878_v16 = vld [vmem:[#allocation9 + $0x8] sm:$0xff]  }
 0x8bb   :  { %v737_v60 = vpop.xlane.xlu1 %736 }
 0x8bc   :  { %vm739_vm8 = vcmp.gt.f32.partialorder %v737_v60, 0.0 }
 0x8bd   :  { %v734_v53 = vpop.xlane.xlu0 %733  ;;  %v741_v54 = vsel %vm739_vm8, %v737_v60, 1.0 }
 0x8be   :  { %vm738_vm9 = vcmp.gt.f32.partialorder %v734_v53, 0.0 }
 0x8bf   :  { %v740_v55 = vsel %vm738_vm9, %v734_v53, 1.0 }
 0x8c0   :  { %1934 = vrcp.f32 %v740_v55 }
 0x8c1   :  { %1936 = vrcp.f32 %v741_v54 }
 0x8cd   :  { %v1935_v58 = vpop.eup %1934  ;;  %v917_v39 = vpop.xlane.xlu0 %916 }
 0x8ce   :  { %v1937_v36 = vpop.eup %1936  ;;  %vm921_vm10 = vcmp.gt.f32.partialorder %v917_v39, 0.0  ;;  %v744_v57 = vmul.f32 %v1935_v58, %v730_v42 }
 0x8cf   :  { %v923_v56 = vsel %vm921_vm10, %v917_v39, 1.0  ;;  %v745_v61 = vmul.f32 %v1937_v36, %v731_v37 }
 0x8d0   :  { %1938 = vrcp.f32 %v923_v56 }
 0x8d1   :  { %v748_v59 = vpop.permute.xlu0 %747  ;;  %v920_v4 = vpop.xlane.xlu1 %919  ;;  %v746_v63 = vpack.c.bf16 %v745_v61, %v744_v57  ;;  %v1603_v57 = vld [vmem:[%s2552_s9] ss:$0 sm:$0xff] }
 0x8d2   :  { %vm922_vm11 = vcmp.gt.f32.partialorder %v920_v4, 0.0  ;;  %1757 = vmatpush3.bf16.msra.mxu1 %v748_v59 }
 0x8d3   :  { %v924_v62 = vsel %vm922_vm11, %v920_v4, 1.0  ;;  %1775 = vmatprep.subr.bf16.mxu1 %v2118_v15 }
 0x8d4   :  { %1940 = vrcp.f32 %v924_v62  ;;  %v1604_v62 = vld [vmem:[%s2553_s10] ss:$0 sm:$0xff] }
 0x8d5   :  { %1759 = vmatmul.mubr.msk.bf16.vlgmr.msra.gmra.mxu1 %vm359_vm3, %v746_v63  ;;  %v931_v2 = vpop.permute.xlu1 %930 }
 0x8d6   :  { %1770 = vmatpush3.bf16.msra.mxu0 %v931_v2  ;;  %1779 = vmatprep.mubr.msk.bf16.mxu1 %vm2119_vm1, %v2118_v15 }
 0x8d7   :  { %1783 = vmatprep.subr.bf16.mxu0 %v2118_v15  ;;  %1776 = vmatpush3.bf16.msra.mxu1 %v1878_v16 }
 0x8d8   :  { %1777 = vmatprep.subr.bf16.mxu1 %v2118_v15 }
 0x8d9   :  { %v614_v3 = vpop.permute.xlu1 %613 }
 0x8da   :  { %620 = vst.msk [vmem:[#allocation2] sm:$0xff] %vm619_vm12, %v614_v3 }
 0x8db   :  { %1778 = vmatpush3.bf16.msra.mxu1 %v1879_v17 }
 0x8dc   :  { %1791 = vmatprep.subr.bf16.mxu1 %v2118_v15 }
 0x8dd   :  { %v616_v5 = vpop.permute.xlu1 %615  ;;  %v1939_v6 = vpop.eup %1938 }
 0x8de   :  { %621 = vst.msk [vmem:[#allocation2 + $0x8] sm:$0xff] %vm619_vm12, %v616_v5  ;;  %v927_v8 = vmul.f32 %v1939_v6, %v913_v48  ;;  %v1883_v6 = vld [vmem:[%s2556_s13 + $0x30] sm:$0xff]  }
 0x8e1   :  { %v1941_v7 = vpop.eup %1940 }
 0x8e2   :  { %v928_v9 = vmul.f32 %v1941_v7, %v914_v51  ;;  %v1881_v51 = vld [vmem:[#allocation11] sm:$0xff]   ;;  %v1884_v7 = vld [vmem:[%s2556_s13 + $0x28] sm:$0xff]  }
 0x8e4   :  { %v929_v10 = vpack.c.bf16 %v928_v9, %v927_v8  ;;  %v1885_v8 = vld [vmem:[%s2556_s13 + $0x20] sm:$0xff]   ;;  %v1886_v9 = vld [vmem:[%s2556_s13 + $0x18] sm:$0xff]  }
 0x8e6   :  { %1772 = vmatmul.mubr.msk.bf16.vlgmr.msra.gmra.mxu0 %vm359_vm3, %v929_v10  ;;  %v1887_v10 = vld [vmem:[%s2556_s13 + $0x10] sm:$0xff]  }
 0x8e7   :  { %1787 = vmatprep.mubr.msk.bf16.mxu0 %vm2119_vm1, %v2118_v15  ;;  %1784 = vmatpush3.bf16.msra.mxu0 %v1880_v50 }
 0x8e8   :  { %1785 = vmatprep.subr.bf16.mxu0 %v2118_v15 }
 0x8eb   :  { %1786 = vmatpush3.bf16.msra.mxu0 %v1881_v51 }
 0x8ec   :  { %1811 = vmatprep.subr.bf16.mxu0 %v2118_v15 }
 0x995   :  { %v787_v11 = vpop.f32.mrf.mxu1 }
 0x996   :  { %796 = vrot.lane.b32.xlu0 %v787_v11, %s2130_s20  ;;  %v1888_v11 = vld [vmem:[%s2556_s13 + $0x8] sm:$0xff]  }
 0x997   :  { %v1760_v12 = vpop.f32.mrf.mxu1 }
 0x998   :  { %v1889_v12 = vld [vmem:[%s2556_s13] sm:$0xff]  }
 0x999   :  { %v790_v13 = vpop.f32.mrf.mxu1 }
 0x99a   :  { %798 = vrot.lane.b32.xlu1 %v790_v13, %s2130_s20  ;;  %v1890_v13 = vld [vmem:[#allocation12 + $0x38] sm:$0xff]   ;;  %s1552_s20 = sshll.u32 %s2132_s0, 4  ;;  %s1553_s20 = int_to_ptr.vmem [resolvable:$true] %s1552_s20 }
 0x99b   :  { %v1761_v14 = vpop.f32.mrf.mxu1  ;;  %p2083_p3 = scmp.lt.s32.totalorder %s1553_s20, %s1553_s20 }
 0x99c   :  { %v1605_v14 = vld [vmem:[%s2555_s12] ss:$0 sm:$0xff] }
 0x9a6   :  { %v970_v18 = vpop.f32.mrf.mxu0 }
 0x9a7   :  { %979 = vrot.lane.b32.xlu0 %v970_v18, %s2131_s4 }
 0x9a8   :  { %v1773_v19 = vpop.f32.mrf.mxu0 }
 0x9aa   :  { %v973_v20 = vpop.f32.mrf.mxu0 }
 0x9ab   :  { %981 = vrot.lane.b32.xlu1 %v973_v20, %s2131_s4  ;;  %s2078_s4 = scalar_lea.vmem %s1553_s20, 256 }
 0x9ac   :  { %v1774_v21 = vpop.f32.mrf.mxu0  ;;  %p2079_p2 = scmp.ne.s32.totalorder %s1553_s20, %s2078_s4  ;;  %p2084_p4 = scmp.lt.s32.totalorder %s2078_s4, %s2078_s4 }
 0x9ae   :  { %p2085_p5 = por %p2084_p4, %p2083_p3 }
 0x9b0   :  { %p2086_p6 = pnand %p2085_p5, %p2079_p2 }
 0xa08   :  { %v797_v22 = vpop.permute.xlu0 %796 }
 0xa09   :  { %803 = vst.msk [vmem:[#allocation2] sm:$0xff] %vm802_vm13, %v797_v22 }
 0xa0c   :  { %v799_v23 = vpop.permute.xlu1 %798 }
 0xa0d   :  { %804 = vst.msk [vmem:[#allocation2 + $0x8] sm:$0xff] %vm802_vm13, %v799_v23 }
 0xa19   :  { %v980_v24 = vpop.permute.xlu0 %979 }
 0xa1a   :  { %986 = vst.msk [vmem:[#allocation2] sm:$0xff] %vm985_vm14, %v980_v24 }
 0xa1d   :  { %v982_v25 = vpop.permute.xlu1 %981 }
 0xa1e   :  { %987 = vst.msk [vmem:[#allocation2 + $0x8] sm:$0xff] %vm985_vm14, %v982_v25 }
 0xa21   :  { %v988_v26 = vld [vmem:[#allocation2] sm:$0xff] }
 0xa25   :  { %v989_v27 = vld [vmem:[#allocation2 + $0x8] sm:$0xff] }
 0xa26   :  { %v990_v28 = vpack.c.bf16 %v989_v27, %v988_v26 }
 0xa28   :  { %1780 = vmatmul.mubr.msk.bf16.vlgmr.msra.gmra.mxu1 %vm148_vm0, %v990_v28 }
 0xa29   :  { %1807 = vmatprep.mubr.msk.bf16.mxu1 %vm2119_vm1, %v2118_v15  ;;  %1792 = vmatpush3.bf16.msra.mxu1 %v1882_v52 }
 0xa2a   :  { %1793 = vmatprep.subr.bf16.mxu1 %v2118_v15 }
 0xa2d   :  { %1794 = vmatpush3.bf16.msra.mxu1 %v1883_v6 }
 0xa2e   :  { %1795 = vmatprep.subr.bf16.mxu1 %v2118_v15 }
 0xa31   :  { %1796 = vmatpush3.bf16.msra.mxu1 %v1884_v7 }
 0xa32   :  { %1797 = vmatprep.subr.bf16.mxu1 %v2118_v15 }
 0xa35   :  { %1798 = vmatpush3.bf16.msra.mxu1 %v1885_v8 }
 0xa36   :  { %1799 = vmatprep.subr.bf16.mxu1 %v2118_v15 }
 0xa39   :  { %1800 = vmatpush3.bf16.msra.mxu1 %v1886_v9 }
 0xa3a   :  { %1801 = vmatprep.subr.bf16.mxu1 %v2118_v15 }
 0xa3d   :  { %1802 = vmatpush3.bf16.msra.mxu1 %v1887_v10 }
 0xa3e   :  { %1803 = vmatprep.subr.bf16.mxu1 %v2118_v15 }
 0xa41   :  { %1804 = vmatpush3.bf16.msra.mxu1 %v1888_v11 }
 0xa42   :  { %1805 = vmatprep.subr.bf16.mxu1 %v2118_v15 }
 0xa45   :  { %1806 = vmatpush3.bf16.msra.mxu1 %v1889_v12 }
 0xa46   :  { %1831 = vmatprep.subr.bf16.mxu1 %v2118_v15 }
 0xae8   :  { %v1044_v29 = vpop.f32.mrf.mxu1 }
 0xae9   :  { %v1051_v31 = vadd.f32 %v1044_v29, %v2269_v0 }
 0xaea   :  { %v1781_v32 = vpop.f32.mrf.mxu1 }
 0xaeb   :  { %v2425_v33 = vadd.f32 %v1602_v30, %v1051_v31 }
 0xaec   :  { %v1047_v34 = vpop.f32.mrf.mxu1 }
 0xaed   :  { %v1052_v35 = vadd.f32 %v1047_v34, %v2271_v1  ;;  %v1062_v37 = vsel %vm148_vm0, %v2425_v33, 0.0  ;;  %v1891_v34 = vld [vmem:[#allocation12 + $0x30] sm:$0xff]  }
 0xaee   :  { %1063 = vadd.xlane.f32.xlu0 %v1062_v37  ;;  %v1782_v38 = vpop.f32.mrf.mxu1  ;;  %v1893_v37 = vld [vmem:[#allocation12 + $0x20] sm:$0xff]  }
 0xaef   :  { %v2430_v40 = vadd.f32 %v1602_v30, %v1052_v35  ;;  %v1892_v35 = vld [vmem:[#allocation12 + $0x28] sm:$0xff]   ;;  %v1894_v38 = vld [vmem:[#allocation12 + $0x18] sm:$0xff]  }
 0xaf1   :  { %v1065_v41 = vsel %vm148_vm0, %v2430_v40, 0.0 }
 0xaf2   :  { %1066 = vadd.xlane.f32.xlu1 %v1065_v41  ;;  %v1895_v41 = vld [vmem:[#allocation12 + $0x10] sm:$0xff]  }
 0xb77   :  { %v1064_v42 = vpop.xlane.xlu0 %1063 }
 0xb78   :  { %v1068_v43 = vmul.f32 0.03125, %v1064_v42  ;;  %v1896_v42 = vld [vmem:[#allocation12 + $0x8] sm:$0xff]  }
 0xb7a   :  { %v1070_v0 = vsub.f32 %v2425_v33, %v1068_v43  ;;  %v1897_v43 = vld [vmem:[#allocation12] sm:$0xff]  }
 0xb7b   :  { %v1067_v44 = vpop.xlane.xlu1 %1066 }
 0xb7c   :  { %v1069_v45 = vmul.f32 0.03125, %v1067_v44  ;;  %v1072_v46 = vmul.f32 %v1070_v0, %v1070_v0  ;;  %v1609_v44 = vld [vmem:[%s2557_s14] ss:$0 sm:$0xff] }
 0xb7e   :  { %v1071_v1 = vsub.f32 %v2430_v40, %v1069_v45  ;;  %v1074_v47 = vsel %vm148_vm0, %v1072_v46, 0.0 }
 0xb7f   :  { %1075 = vadd.xlane.f32.xlu0 %v1074_v47 }
 0xb80   :  { %v1073_v48 = vmul.f32 %v1071_v1, %v1071_v1 }
 0xb82   :  { %v1077_v49 = vsel %vm148_vm0, %v1073_v48, 0.0 }
 0xb83   :  { %1078 = vadd.xlane.f32.xlu0 %v1077_v49 }
 0xc08   :  { %v1076_v60 = vpop.xlane.xlu0 %1075 }
 0xc09   :  { %v1080_v53 = vmul.f32 0.03125, %v1076_v60 }
 0xc0b   :  { %v1082_v54 = vadd.f32 1e-05, %v1080_v53 }
 0xc0c   :  { %v1079_v55 = vpop.xlane.xlu0 %1078 }
 0xc0d   :  { %1942 = vrsqrt.f32 %v1082_v54  ;;  %v1081_v58 = vmul.f32 0.03125, %v1079_v55 }
 0xc0f   :  { %v1083_v39 = vadd.f32 1e-05, %v1081_v58 }
 0xc11   :  { %1944 = vrsqrt.f32 %v1083_v39 }
 0xc1a   :  { %v1943_v36 = vpop.eup %1942 }
 0xc1b   :  { %v1086_v56 = vmul.f32 %v1943_v36, %v1070_v0  ;;  %v1898_v0 = vld [vmem:[%s2560_s17 + $0x38] sm:$0xff]  }
 0xc1d   :  { %v1095_v61 = vmul.f32 %v1603_v57, %v1086_v56 }
 0xc1e   :  { %v1945_v59 = vpop.eup %1944 }
 0xc1f   :  { %v1087_v4 = vmul.f32 %v1945_v59, %v1071_v1  ;;  %v1104_v2 = vadd.f32 %v1604_v62, %v1095_v61  ;;  %v1900_v59 = vld [vmem:[%s2560_s17 + $0x28] sm:$0xff]   ;;  %v1902_v61 = vld [vmem:[%s2560_s17 + $0x18] sm:$0xff]  }
 0xc21   :  { %v1096_v63 = vmul.f32 %v1603_v57, %v1087_v4  ;;  %v1899_v57 = vld [vmem:[%s2560_s17 + $0x30] sm:$0xff]   ;;  %v1901_v4 = vld [vmem:[%s2560_s17 + $0x20] sm:$0xff]  }
 0xc23   :  { %v1105_v3 = vadd.f32 %v1604_v62, %v1096_v63  ;;  %v1903_v62 = vld [vmem:[%s2560_s17 + $0x10] sm:$0xff]   ;;  %v1904_v63 = vld [vmem:[%s2560_s17 + $0x8] sm:$0xff]  }
 0xc25   :  { %v1106_v5 = vpack.c.bf16 %v1105_v3, %v1104_v2  ;;  %v1905_v2 = vld [vmem:[%s2560_s17] sm:$0xff]  }
 0xc26   :  { %v1618_v3 = vld [vmem:[%s2559_s16] ss:$0 sm:$0xff] }
 0xc27   :  { %1788 = vmatmul.mubr.msk.bf16.vlgmr.msra.gmra.mxu0 %vm148_vm0, %v1106_v5 }
 0xc28   :  { %1827 = vmatprep.mubr.msk.bf16.mxu0 %vm2119_vm1, %v2118_v15  ;;  %1812 = vmatpush3.bf16.msra.mxu0 %v1890_v13 }
 0xc29   :  { %1813 = vmatprep.subr.bf16.mxu0 %v2118_v15 }
 0xc2c   :  { %1814 = vmatpush3.bf16.msra.mxu0 %v1891_v34 }
 0xc2d   :  { %1815 = vmatprep.subr.bf16.mxu0 %v2118_v15 }
 0xc30   :  { %1816 = vmatpush3.bf16.msra.mxu0 %v1892_v35 }
 0xc31   :  { %1817 = vmatprep.subr.bf16.mxu0 %v2118_v15 }
 0xc34   :  { %1818 = vmatpush3.bf16.msra.mxu0 %v1893_v37 }
 0xc35   :  { %1819 = vmatprep.subr.bf16.mxu0 %v2118_v15 }
 0xc38   :  { %1820 = vmatpush3.bf16.msra.mxu0 %v1894_v38 }
 0xc39   :  { %1821 = vmatprep.subr.bf16.mxu0 %v2118_v15 }
 0xc3c   :  { %1822 = vmatpush3.bf16.msra.mxu0 %v1895_v41 }
 0xc3d   :  { %1823 = vmatprep.subr.bf16.mxu0 %v2118_v15 }
 0xc40   :  { %1824 = vmatpush3.bf16.msra.mxu0 %v1896_v42 }
 0xc41   :  { %1825 = vmatprep.subr.bf16.mxu0 %v2118_v15 }
 0xc44   :  { %1826 = vmatpush3.bf16.msra.mxu0 %v1897_v43 }
 0xce7   :  { %v1167_v16 = vpop.f32.mrf.mxu0 }
 0xce8   :  { %v1168_v17 = vadd.f32 %v1605_v14, %v1167_v16 }
 0xce9   :  { %v1789_v18 = vpop.f32.mrf.mxu0 }
 0xcea   :  { %v1176_v19 = vmul.f32 0.70710677, %v1168_v17  ;;  %v1174_v27 = vmul.f32 0.5, %v1168_v17 }
 0xceb   :  { %v1170_v20 = vpop.f32.mrf.mxu0 }
 0xcec   :  { %1946 = verf.f32 %v1176_v19  ;;  %v1171_v21 = vadd.f32 %v1605_v14, %v1170_v20 }
 0xced   :  { %v1790_v22 = vpop.f32.mrf.mxu0 }
 0xcee   :  { %v1177_v23 = vmul.f32 0.70710677, %v1171_v21  ;;  %v1175_v28 = vmul.f32 0.5, %v1171_v21  ;;  %v1627_v22 = vld [vmem:[%s2561_s18] ss:$0 sm:$0xff] }
 0xcf0   :  { %1948 = verf.f32 %v1177_v23 }
 0xcf9   :  { %v1947_v24 = vpop.eup %1946 }
 0xcfa   :  { %v1180_v25 = vadd.f32 1.0, %v1947_v24 }
 0xcfc   :  { %v1182_v30 = vmul.f32 %v1180_v25, %v1174_v27 }
 0xcfd   :  { %v1949_v26 = vpop.eup %1948 }
 0xcfe   :  { %v1181_v29 = vadd.f32 1.0, %v1949_v26 }
 0xd00   :  { %v1183_v31 = vmul.f32 %v1181_v29, %v1175_v28 }
 0xd02   :  { %v1184_v32 = vpack.c.bf16 %v1183_v31, %v1182_v30 }
 0xd04   :  { %1808 = vmatmul.mubr.bf16.vlgmr.msra.gmra.mxu1 %v1184_v32 }
 0xd05   :  { %1847 = vmatprep.mubr.msk.bf16.mxu1 %vm2119_vm1, %v2118_v15  ;;  %1832 = vmatpush3.bf16.msra.mxu1 %v1898_v0 }
 0xd06   :  { %1833 = vmatprep.subr.bf16.mxu1 %v2118_v15 }
 0xd09   :  { %1834 = vmatpush3.bf16.msra.mxu1 %v1899_v57 }
 0xd0a   :  { %1835 = vmatprep.subr.bf16.mxu1 %v2118_v15 }
 0xd0d   :  { %1836 = vmatpush3.bf16.msra.mxu1 %v1900_v59 }
 0xd0e   :  { %1837 = vmatprep.subr.bf16.mxu1 %v2118_v15 }
 0xd11   :  { %1838 = vmatpush3.bf16.msra.mxu1 %v1901_v4 }
 0xd12   :  { %1839 = vmatprep.subr.bf16.mxu1 %v2118_v15 }
 0xd15   :  { %1840 = vmatpush3.bf16.msra.mxu1 %v1902_v61 }
 0xd16   :  { %1841 = vmatprep.subr.bf16.mxu1 %v2118_v15 }
 0xd19   :  { %1842 = vmatpush3.bf16.msra.mxu1 %v1903_v62 }
 0xd1a   :  { %1843 = vmatprep.subr.bf16.mxu1 %v2118_v15 }
 0xd1d   :  { %1844 = vmatpush3.bf16.msra.mxu1 %v1904_v63 }
 0xd1e   :  { %1845 = vmatprep.subr.bf16.mxu1 %v2118_v15 }
 0xd21   :  { %1846 = vmatpush3.bf16.msra.mxu1 %v1905_v2 }
 0xdc4   :  { %v1290_v45 = vpop.f32.mrf.mxu1 }
 0xdc5   :  { %v1291_v46 = vadd.f32 %v1609_v44, %v1290_v45 }
 0xdc6   :  { %v1809_v1 = vpop.f32.mrf.mxu1 }
 0xdc7   :  { %v1299_v47 = vmul.f32 0.70710677, %v1291_v46  ;;  %v1297_v54 = vmul.f32 0.5, %v1291_v46 }
 0xdc8   :  { %v1293_v48 = vpop.f32.mrf.mxu1 }
 0xdc9   :  { %1950 = verf.f32 %v1299_v47  ;;  %v1294_v49 = vadd.f32 %v1609_v44, %v1293_v48 }
 0xdca   :  { %v1810_v50 = vpop.f32.mrf.mxu1 }
 0xdcb   :  { %v1300_v51 = vmul.f32 0.70710677, %v1294_v49  ;;  %v1298_v55 = vmul.f32 0.5, %v1294_v49 }
 0xdcd   :  { %1952 = verf.f32 %v1300_v51 }
 0xdd6   :  { %v1951_v52 = vpop.eup %1950 }
 0xdd7   :  { %v1303_v60 = vadd.f32 1.0, %v1951_v52 }
 0xdd9   :  { %v1305_v39 = vmul.f32 %v1303_v60, %v1297_v54 }
 0xdda   :  { %v1953_v53 = vpop.eup %1952 }
 0xddb   :  { %v1304_v58 = vadd.f32 1.0, %v1953_v53 }
 0xddd   :  { %v1306_v36 = vmul.f32 %v1304_v58, %v1298_v55 }
 0xddf   :  { %v1307_v56 = vpack.c.bf16 %v1306_v36, %v1305_v39 }
 0xde1   :  { %1828 = vmatmul.mubr.bf16.vlgmr.msra.gmra.mxu0 %v1307_v56 }
 0xea1   :  { %v1413_v5 = vpop.f32.mrf.mxu0 }
 0xea2   :  { %v1414_v6 = vadd.f32 %v1618_v3, %v1413_v5 }
 0xea3   :  { %v1829_v7 = vpop.f32.mrf.mxu0 }
 0xea4   :  { %v1422_v8 = vmul.f32 0.70710677, %v1414_v6  ;;  %v1420_v16 = vmul.f32 0.5, %v1414_v6 }
 0xea5   :  { %v1416_v9 = vpop.f32.mrf.mxu0 }
 0xea6   :  { %1954 = verf.f32 %v1422_v8  ;;  %v1417_v10 = vadd.f32 %v1618_v3, %v1416_v9 }
 0xea7   :  { %v1830_v11 = vpop.f32.mrf.mxu0 }
 0xea8   :  { %v1423_v12 = vmul.f32 0.70710677, %v1417_v10  ;;  %v1421_v17 = vmul.f32 0.5, %v1417_v10 }
 0xeaa   :  { %1956 = verf.f32 %v1423_v12 }
 0xeb3   :  { %v1955_v15 = vpop.eup %1954 }
 0xeb4   :  { %v1426_v13 = vadd.f32 1.0, %v1955_v15 }
 0xeb6   :  { %v1428_v19 = vmul.f32 %v1426_v13, %v1420_v16 }
 0xeb7   :  { %v1957_v14 = vpop.eup %1956 }
 0xeb8   :  { %v1427_v18 = vadd.f32 1.0, %v1957_v14 }
 0xeba   :  { %v1429_v20 = vmul.f32 %v1427_v18, %v1421_v17 }
 0xebc   :  { %v1430_v21 = vpack.c.bf16 %v1429_v20, %v1428_v19 }
 0xebe   :  { %1848 = vmatmul.mubr.bf16.vlgmr.msra.gmra.mxu1 %v1430_v21 }
 0xf7e   :  { %v1536_v23 = vpop.f32.mrf.mxu1 }
 0xf7f   :  { %v1537_v24 = vadd.f32 %v1627_v22, %v1536_v23 }
 0xf80   :  { %v1849_v25 = vpop.f32.mrf.mxu1 }
 0xf81   :  { %v1543_v26 = vadd.f32 %v1537_v24, %v2425_v33 }
 0xf82   :  { %v1539_v27 = vpop.f32.mrf.mxu1 }
 0xf83   :  { %1545 = vst.msk [vmem:[#allocation14] sm:$0xff] %vm148_vm0, %v1543_v26  ;;  %v1540_v28 = vadd.f32 %v1627_v22, %v1539_v27 }
 0xf84   :  { %v1850_v29 = vpop.f32.mrf.mxu1 }
 0xf85   :  { %v1544_v30 = vadd.f32 %v1540_v28, %v2430_v40 }
 0xf87   :  { %1546 = vst.msk [vmem:[#allocation14 + $0x8] sm:$0xff] %vm148_vm0, %v1544_v30 }
 0xf88   :  { %2089 = shalt.err (!%p2086_p6)
}
 0xf89   :  { %1558 = dma.vmem_to_hbm [thread:$0]  %s1553_s20, 256, %s2562_s19, [#allocation5], %s2109_s21, %s2109_s21, %s2110_s1  }
 0xf8a   :  { %2106 = dma.done.wait [#allocation5], 256  }
 0xf8b   :  { %2107 = vsyncadd [#allocation5], 4294967040 }
 0xf8c   :  { %1562 = vsyncpa [#allocation4], 1 }
 0xf8d   :  { %1563 = vsyncpa [#allocation7], 1 }
 0xf8e   :  { %1564 = vsyncpa [#allocation10], 1 }
 0xf8f   :  { %1565 = vsyncpa [#allocation13], 1 }
 0xf90   :  { %1566 = vsyncpa [#allocation5], 1 }

</bundles_post_ra>
